<compile_context>
chip_gen: v7x
topology: tpu7x:2x2x1
jax: 0.10.0
libtpu: 0.0.40
codegen_flags: <defaults>
</compile_context>

<pallas_src>
import functools

import jax
import jax.numpy as jnp
from jax import lax
from jax.experimental import pallas as pl
from jax.experimental.pallas import tpu as pltpu

_STRIP_ROWS = 128  # softmax/KL tail strip height (sublane-aligned; wrapper enforces N % 128 == 0)


def _dal_kernel(x_ref, y_ref, out_ref, e1_ref, e2_ref, *, inv_temp):
    # Native dtype into the MXU (bf16 stays bf16); accumulate in f32.
    x = x_ref[...]
    y = y_ref[...]
    n = x.shape[0]

    contract_last = (((1,), (1,)), ((), ()))  # A (.) B^T: contract the last dims

    # --- single MXU matmul: S = x @ y.T  (sim2 == S.T is never recomputed) -------------
    s = lax.dot_general(x, y, contract_last, preferred_element_type=jnp.float32)

    # sim11 = exp(S / temp); sim21 = sim11.T via one XLU transpose (no 2nd matmul / exp).
    # Both are staged in VMEM scratch so the softmax/KL tail can be strip-mined over rows
    # instead of materialising four more (N, N) matrices.
    e1 = jnp.exp(s * inv_temp)          # unguarded exp, as in PyTorch (see header note)
    e1_ref[...] = e1
    e2_ref[...] = jnp.transpose(e1)

    # --- sharpen(sim1) and sharpen(sim2) share Q = S**4 ---------------------------------
    # sharpen T is fixed at 0.25 (exponent 4) as in the PyTorch module, independent of temp.
    q = s * s
    q = q * q                           # S**4 (repeated squaring; negative S like torch.pow)
    # Exact reciprocals of O(N) vectors (free).  A fully-zero row/column of S gives inf
    # here and NaN downstream -- identical to the PyTorch division by zero.
    inv_rowq = pl.reciprocal(jnp.sum(q, axis=1, keepdims=True))   # (N, 1)
    inv_colq = pl.reciprocal(jnp.sum(q, axis=0, keepdims=True))   # (1, N)

    # r1[j] = sum_k exp(sharpen(S))[j, k], needed with j in the LANE dim (it divides
    # column j of sim11).  Instead of transposing the full (N, N) exp(sharpen) matrix
    # (old version: a whole-matrix XLU relayout + an (N, N) temp), reduce its rows on
    # the otherwise-idle MXU: ones(8, N) (.) exp_sh1^T -> (8, N); row 0 is r1 in lanes.
    exp_sh1 = jnp.exp(q * inv_rowq)                               # (N, N)
    r1 = lax.dot_general(jnp.ones((8, n), jnp.float32), exp_sh1, contract_last,
                         preferred_element_type=jnp.float32)[0:1, :]   # (1, N)
    # r2[j] = sum_k exp(sharpen(S.T))[j, k] falls out of a natural column reduce.
    r2 = jnp.sum(jnp.exp(q * inv_colq), axis=0, keepdims=True)          # (1, N)
    inv_r1 = pl.reciprocal(r1)          # exact, O(N)
    inv_r2 = pl.reciprocal(r2)

    # --- strip-mined fused softmax + log_softmax + symmetric KL -------------------------
    # d1[i, j] = sim11[i, j] / r1[j],  d2[i, j] = sim11[j, i] / r2[j]   (the PyTorch
    # (N, N) / (N,) broadcast).  0.5*(KLD(d1, d2) + KLD(d2, d1)) with 'batchmean' folds to
    #   sum((t1 - t2) * (li1 - li2)) * 0.5 / N.
    n_strips = n // _STRIP_ROWS

    def strip_body(si, acc):
        r0 = pl.multiple_of(si * _STRIP_ROWS, _STRIP_ROWS)
        d1s = e1_ref[pl.ds(r0, _STRIP_ROWS), :] * inv_r1   # (TR, N)
        d2s = e2_ref[pl.ds(r0, _STRIP_ROWS), :] * inv_r2   # (TR, N)
        # Softmax / log-softmax WITHOUT max-subtraction: d1s/d2s are positive and
        # O(e^(1/temp)/N) under the normalised-embedding assumption, so exp cannot
        # overflow; removes two cross-lane max reduces + two subtract passes per strip
        # (same caveat as the unguarded exp above).
        ez1 = jnp.exp(d1s)
        ez2 = jnp.exp(d2s)
        sez1 = jnp.sum(ez1, axis=-1, keepdims=True)        # (TR, 1)
        sez2 = jnp.sum(ez2, axis=-1, keepdims=True)
        # approx=True -> EUP reciprocal; ~1e-4 relative perturbation of the t-terms.
        t_diff = (ez1 * pl.reciprocal(sez1, approx=True)
                  - ez2 * pl.reciprocal(sez2, approx=True))
        li_diff = (d1s - d2s) + (jnp.log(sez2) - jnp.log(sez1))
        return acc + jnp.sum(t_diff * li_diff)

    acc = lax.fori_loop(0, n_strips, strip_body, jnp.float32(0.0),
                        unroll=(n_strips <= 4))
    out_ref[0, 0] = (0.5 / n) * acc


def distribution_align_loss(x, y, temp=0.25):
    """Pallas TPU forward of DistributionAlignLoss. x, y: (N, D); returns scalar f32."""
    assert x.ndim == 2 and x.shape == y.shape
    n, d = x.shape
    # Lane alignment: N % 128 keeps the in-kernel transpose, the axis=-1 reduces and the
    # strip loads/stores on the fast unmasked paths (pad the batch if needed).
    assert n % 128 == 0, "batch size must be a multiple of 128 for this kernel (pad it)"

    # VMEM limit gated per chip: ~3/4 of physical capacity, capped at 110 MiB
    # (-> ~48 MiB on v7x's 64 MiB, ~96 MiB on v5e/v6e's 128 MiB).  Conservative 64 MiB
    # assumption if the query is unavailable.
    try:
        vmem_cap = int(getattr(pltpu.get_tpu_info(), "vmem_capacity_bytes",
                               64 * 1024 * 1024))
    except Exception:  # pragma: no cover - hardware-query fallback
        vmem_cap = 64 * 1024 * 1024
    vmem_limit = min((vmem_cap * 3) // 4, 110 * 1024 * 1024)

    kernel = functools.partial(_dal_kernel, inv_temp=1.0 / float(temp))
    out = pl.pallas_call(
        kernel,
        out_shape=jax.ShapeDtypeStruct((1, 1), jnp.float32),
        in_specs=[
            pl.BlockSpec((n, d), lambda: (0, 0)),
            pl.BlockSpec((n, d), lambda: (0, 0)),
        ],
        out_specs=pl.BlockSpec(memory_space=pltpu.MemorySpace.SMEM),
        scratch_shapes=[
            pltpu.VMEM((n, n), jnp.float32),   # sim11 = exp(S/temp)
            pltpu.VMEM((n, n), jnp.float32),   # sim21 = sim11.T
        ],
        compiler_params=pltpu.CompilerParams(vmem_limit_bytes=int(vmem_limit)),
        # Advisory: compute-heavy, HBM-light custom call (inputs are only 2*N*D elems).
        cost_estimate=pl.CostEstimate(
            flops=2 * n * n * d + 16 * n * n + 30 * n * n,
            transcendentals=5 * n * n,
            bytes_accessed=2 * n * d * x.dtype.itemsize + 4,
        ),
    )(x, y)
    return out[0, 0]


def _reference(x, y, temp=0.25):
    """Pure-JAX mirror of the PyTorch forward (including the (N,) sum broadcast)."""

    def sharpen(p):  # T = 0.25 -> exponent 4
        p4 = p * p
        p4 = p4 * p4
        return p4 / jnp.sum(p4, axis=1, keepdims=True)

    def kld(targets, inputs):
        t = jax.nn.softmax(targets, axis=-1)
        li = jax.nn.log_softmax(inputs, axis=-1)
        kl = jnp.where(t > 0, t * (jnp.log(t) - li), 0.0)
        return jnp.sum(kl) / inputs.shape[0]

    hp = jax.lax.Precision.HIGHEST
    sim1 = jnp.matmul(x, y.T, precision=hp)
    sim11 = jnp.exp(sim1 / temp)
    d1 = sim11 / jnp.sum(jnp.exp(sharpen(sim1)), axis=1)
    sim2 = jnp.matmul(y, x.T, precision=hp)
    sim21 = jnp.exp(sim2 / temp)
    d2 = sim21 / jnp.sum(jnp.exp(sharpen(sim2)), axis=1)
    return 0.5 * (kld(d1, d2) + kld(d2, d1))


if __name__ == "__main__":
    key = jax.random.PRNGKey(0)
    kx, ky = jax.random.split(key)
    # A small batch of 128 L2-normalised 32-d embeddings: N=128 satisfies the lane
    # alignment contract; D=32 keeps the inputs tiny.
    N, D = 128, 32
    x = jax.random.normal(kx, (N, D), dtype=jnp.float32)
    y = jax.random.normal(ky, (N, D), dtype=jnp.float32)
    x = x / jnp.linalg.norm(x, axis=1, keepdims=True)
    y = y / jnp.linalg.norm(y, axis=1, keepdims=True)

    loss = distribution_align_loss(x, y, temp=0.25)
    loss = jax.block_until_ready(loss)

    ref = _reference(x, y, temp=0.25)
    assert bool(jnp.isfinite(loss)), ("non-finite loss", loss)
    assert bool(jnp.allclose(loss, ref, rtol=1e-2, atol=2e-4)), (loss, ref)
    print("KERNEL_OK")
</pallas_src>

<mosaic_0001>
module attributes {stable_mosaic.version = 11 : i64} {
  func.func @_dal_kernel(%arg0: memref<128x32xf32, #tpu.memory_space<vmem>>, %arg1: memref<128x32xf32, #tpu.memory_space<vmem>>, %arg2: memref<1x1xf32, #tpu.memory_space<smem>>, %arg3: memref<128x128xf32, #tpu.memory_space<vmem>>, %arg4: memref<128x128xf32, #tpu.memory_space<vmem>>) attributes {dimension_semantics = [], scalar_prefetch = 0 : i64, scratch_operands = 2 : i64, tpu.core_type = #tpu.core_type<tc>} {
    %c0 = arith.constant 0 : index
    %c0_0 = arith.constant 0 : index
    %0 = vector.load %arg0[%c0, %c0_0] : memref<128x32xf32, #tpu.memory_space<vmem>>, vector<128x32xf32>
    %c0_1 = arith.constant 0 : index
    %c0_2 = arith.constant 0 : index
    %1 = vector.load %arg1[%c0_1, %c0_2] : memref<128x32xf32, #tpu.memory_space<vmem>>, vector<128x32xf32>
    %cst = arith.constant dense<0.000000e+00> : vector<128x128xf32>
    %2 = tpu.matmul %0, %1, %cst {dimension_numbers = #tpu.dot_dimension_numbers<[1], [1], [0], [0], [0, 0, 1, 0], [], []>} : vector<128x32xf32>, vector<128x32xf32>, vector<128x128xf32> -> vector<128x128xf32>
    %cst_3 = arith.constant 4.000000e+00 : f32
    %3 = vector.broadcast %cst_3 : f32 to vector<128x128xf32>
    %4 = arith.mulf %2, %3 : vector<128x128xf32>
    %5 = math.exp %4 : vector<128x128xf32>
    %c0_4 = arith.constant 0 : index
    %c0_5 = arith.constant 0 : index
    %6 = vector.load %arg3[%c0_4, %c0_5] : memref<128x128xf32, #tpu.memory_space<vmem>>, vector<128x128xf32>
    tpu.vector_store %arg3[%c0_4, %c0_5], %5 {strides = array<i32>} : memref<128x128xf32, #tpu.memory_space<vmem>>, vector<128x128xf32>,
    %7 = tpu.transpose %5, [1, 0] : vector<128x128xf32> -> vector<128x128xf32>
    %c0_6 = arith.constant 0 : index
    %c0_7 = arith.constant 0 : index
    %8 = vector.load %arg4[%c0_6, %c0_7] : memref<128x128xf32, #tpu.memory_space<vmem>>, vector<128x128xf32>
    tpu.vector_store %arg4[%c0_6, %c0_7], %7 {strides = array<i32>} : memref<128x128xf32, #tpu.memory_space<vmem>>, vector<128x128xf32>,
    %9 = arith.mulf %2, %2 : vector<128x128xf32>
    %10 = arith.mulf %9, %9 : vector<128x128xf32>
    %cst_8 = arith.constant dense<0.000000e+00> : vector<128xf32>
    %11 = vector.multi_reduction <add>, %10, %cst_8 [1] : vector<128x128xf32> to vector<128xf32>
    %12 = vector.shape_cast %11 : vector<128xf32> to vector<128x1xf32>
    %13 = tpu.reciprocal %12 : vector<128x1xf32> -> vector<128x1xf32>
    %cst_9 = arith.constant dense<0.000000e+00> : vector<128xf32>
    %14 = vector.multi_reduction <add>, %10, %cst_9 [0] : vector<128x128xf32> to vector<128xf32>
    %15 = vector.shape_cast %14 : vector<128xf32> to vector<1x128xf32>
    %16 = tpu.reciprocal %15 : vector<1x128xf32> -> vector<1x128xf32>
    %17 = vector.broadcast %13 : vector<128x1xf32> to vector<128x128xf32>
    %18 = arith.mulf %10, %17 : vector<128x128xf32>
    %19 = math.exp %18 : vector<128x128xf32>
    %cst_10 = arith.constant 1.000000e+00 : f32
    %20 = vector.broadcast %cst_10 : f32 to vector<8x128xf32>
    %cst_11 = arith.constant dense<0.000000e+00> : vector<8x128xf32>
    %21 = tpu.matmul %20, %19, %cst_11 {dimension_numbers = #tpu.dot_dimension_numbers<[1], [1], [0], [0], [0, 0, 1, 0], [], []>} : vector<8x128xf32>, vector<128x128xf32>, vector<8x128xf32> -> vector<8x128xf32>
    %22 = vector.extract_strided_slice %21 {offsets = [0, 0], sizes = [1, 128], strides = [1, 1]} : vector<8x128xf32> to vector<1x128xf32>
    %23 = vector.broadcast %16 : vector<1x128xf32> to vector<128x128xf32>
    %24 = arith.mulf %10, %23 : vector<128x128xf32>
    %25 = math.exp %24 : vector<128x128xf32>
    %cst_12 = arith.constant dense<0.000000e+00> : vector<128xf32>
    %26 = vector.multi_reduction <add>, %25, %cst_12 [0] : vector<128x128xf32> to vector<128xf32>
    %27 = vector.shape_cast %26 : vector<128xf32> to vector<1x128xf32>
    %28 = tpu.reciprocal %22 : vector<1x128xf32> -> vector<1x128xf32>
    %29 = tpu.reciprocal %27 : vector<1x128xf32> -> vector<1x128xf32>
    %cst_13 = arith.constant 0.000000e+00 : f32
    %c0_i32 = arith.constant 0 : i32
    %c128_i32 = arith.constant 128 : i32
    %30 = arith.muli %c0_i32, %c128_i32 : i32
    %31 = tpu.assume_multiple %30, 128 : i32
    %32 = arith.index_cast %31 : i32 to index
    %c0_14 = arith.constant 0 : index
    %33 = vector.load %arg3[%32, %c0_14] : memref<128x128xf32, #tpu.memory_space<vmem>>, vector<128x128xf32>
    %34 = vector.broadcast %28 : vector<1x128xf32> to vector<128x128xf32>
    %35 = arith.mulf %33, %34 : vector<128x128xf32>
    %36 = arith.index_cast %31 : i32 to index
    %c0_15 = arith.constant 0 : index
    %37 = vector.load %arg4[%36, %c0_15] : memref<128x128xf32, #tpu.memory_space<vmem>>, vector<128x128xf32>
    %38 = vector.broadcast %29 : vector<1x128xf32> to vector<128x128xf32>
    %39 = arith.mulf %37, %38 : vector<128x128xf32>
    %40 = math.exp %35 : vector<128x128xf32>
    %41 = math.exp %39 : vector<128x128xf32>
    %cst_16 = arith.constant dense<0.000000e+00> : vector<128xf32>
    %42 = vector.multi_reduction <add>, %40, %cst_16 [1] : vector<128x128xf32> to vector<128xf32>
    %43 = vector.shape_cast %42 : vector<128xf32> to vector<128x1xf32>
    %cst_17 = arith.constant dense<0.000000e+00> : vector<128xf32>
    %44 = vector.multi_reduction <add>, %41, %cst_17 [1] : vector<128x128xf32> to vector<128xf32>
    %45 = vector.shape_cast %44 : vector<128xf32> to vector<128x1xf32>
    %46 = tpu.reciprocal %43 {approx = true} : vector<128x1xf32> -> vector<128x1xf32>
    %47 = vector.broadcast %46 : vector<128x1xf32> to vector<128x128xf32>
    %48 = arith.mulf %40, %47 : vector<128x128xf32>
    %49 = tpu.reciprocal %45 {approx = true} : vector<128x1xf32> -> vector<128x1xf32>
    %50 = vector.broadcast %49 : vector<128x1xf32> to vector<128x128xf32>
    %51 = arith.mulf %41, %50 : vector<128x128xf32>
    %52 = arith.subf %48, %51 : vector<128x128xf32>
    %53 = arith.subf %35, %39 : vector<128x128xf32>
    %54 = math.log %45 : vector<128x1xf32>
    %55 = math.log %43 : vector<128x1xf32>
    %56 = arith.subf %54, %55 : vector<128x1xf32>
    %57 = vector.broadcast %56 : vector<128x1xf32> to vector<128x128xf32>
    %58 = arith.addf %53, %57 : vector<128x128xf32>
    %59 = arith.mulf %52, %58 : vector<128x128xf32>
    %60 = vector.shape_cast %59 : vector<128x128xf32> to vector<1x128x128xf32>
    %cst_18 = arith.constant dense<0.000000e+00> : vector<1xf32>
    %61 = vector.multi_reduction <add>, %60, %cst_18 [1, 2] : vector<1x128x128xf32> to vector<1xf32>
    %62 = vector.shape_cast %61 : vector<1xf32> to vector<1x1x1xf32>
    %63 = vector.extract %62[0, 0, 0] : f32 from vector<1x1x1xf32>
    %64 = arith.addf %cst_13, %63 : f32
    %c1_i32 = arith.constant 1 : i32
    %cst_19 = arith.constant 3.906250e-03 : f32
    %65 = arith.mulf %cst_19, %64 : f32
    %c0_20 = arith.constant 0 : index
    %c0_21 = arith.constant 0 : index
    %66 = memref.load %arg2[%c0_20, %c0_21] : memref<1x1xf32, #tpu.memory_space<smem>>
    memref.store %65, %arg2[%c0_20, %c0_21] : memref<1x1xf32, #tpu.memory_space<smem>>
    return
  }
}

</mosaic_0001>

<bundles_post_ra>
// kernel: tpu_custom_call.1
= control target key start
LH: loop header
LB: loop body
LE: loop exit
PB: predicated region body
PF: predicated region fallthrough
CT: control target
= control target key end

     0   :  { %vm44_vm0 = vcmask 261120   ;;  %s2495_s0 = inlined_call_operand.vmem [shape: f32[128,32], index: 0, kind: input, shape index: {}]   ;;  %s2496_s1 = inlined_call_operand.vmem [shape: f32[128,32], index: 1, kind: input, shape index: {}]   ;;  %s2497_s2 = inlined_call_operand.hbm [shape: f32[1,1], index: 2, kind: output, shape index: {}]  }
   0x1   :  { %v28_v0 = vld [vmem:[%s2496_s1] sm:$0xff]  ;;  %v29_v1 = vld [vmem:[%s2496_s1 + $0x8] sm:$0xff]  ;;  %v30_v2 = vld [vmem:[%s2496_s1 + $0x10] sm:$0xff] }
   0x2   :  { %v1306_v3 = vpack.c.bf16 %v29_v1, %v28_v0  ;;  %vm1754_vm1 = vmpackc.low %vm44_vm0, %vm44_vm0  ;;  %v31_v5 = vld [vmem:[%s2496_s1 + $0x18] sm:$0xff]  ;;  %v12_v7 = vld [vmem:[%s2495_s0] sm:$0xff] }
   0x3   :  { %v1312_v6 = vpack.c.bf16 %v31_v5, %v30_v2  ;;  %v32_v8 = vld [vmem:[%s2496_s1 + $0x20] sm:$0xff]  ;;  %v33_v9 = vld [vmem:[%s2496_s1 + $0x28] sm:$0xff]  ;;  %1247 = vmatprep.mubr.msk.f32.mxu0 %vm44_vm0, %v12_v7 }
   0x4   :  { %1308 = vmatprep.subr.msk.bf16.mxu0 %vm1754_vm1, %v1306_v3  ;;  %v1318_v10 = vpack.c.bf16 %v33_v9, %v32_v8 }
   0x5   :  { %1311 = vmatpush3.bf16.xpose.msk.msra.mxu0 %vm1754_vm1, %v1306_v3 }
   0x6   :  { %1314 = vmatprep.subr.msk.bf16.mxu0 %vm1754_vm1, %v1312_v6 }
   0x7   :  { %7 = vsyncpa [#allocation5], 0  ;;  %v34_v11 = vld [vmem:[%s2496_s1 + $0x30] sm:$0xff]  ;;  %v35_v12 = vld [vmem:[%s2496_s1 + $0x38] sm:$0xff]  ;;  %vm1724_vm2 = vmmov 0  }
   0x8   :  { %v1324_v13 = vpack.c.bf16 %v35_v12, %v34_v11  ;;  %v36_v14 = vld [vmem:[%s2496_s1 + $0x40] sm:$0xff]  ;;  %v37_v15 = vld [vmem:[%s2496_s1 + $0x48] sm:$0xff]  ;;  %v38_v17 = vld [vmem:[%s2496_s1 + $0x50] sm:$0xff] }
   0x9   :  { %v1330_v16 = vpack.c.bf16 %v37_v15, %v36_v14  ;;  %v39_v18 = vld [vmem:[%s2496_s1 + $0x58] sm:$0xff]  ;;  %v40_v20 = vld [vmem:[%s2496_s1 + $0x60] sm:$0xff]  ;;  %v41_v21 = vld [vmem:[%s2496_s1 + $0x68] sm:$0xff] }
   0xa   :  { %v1336_v19 = vpack.c.bf16 %v39_v18, %v38_v17  ;;  %v1342_v22 = vpack.c.bf16 %v41_v21, %v40_v20  ;;  %v42_v23 = vld [vmem:[%s2496_s1 + $0x70] sm:$0xff]  ;;  %v43_v24 = vld [vmem:[%s2496_s1 + $0x78] sm:$0xff]  ;;  %v13_v26 = vld [vmem:[%s2495_s0 + $0x8] sm:$0xff]  ;;  %s1711_s1 = scalar_lea.hbm %s2497_s2, 16 }
   0xb   :  { %v1348_v25 = vpack.c.bf16 %v43_v24, %v42_v23  ;;  %v14_v27 = vld [vmem:[%s2495_s0 + $0x10] sm:$0xff]  ;;  %v15_v28 = vld [vmem:[%s2495_s0 + $0x18] sm:$0xff]  ;;  %v16_v29 = vld [vmem:[%s2495_s0 + $0x20] sm:$0xff]  ;;  %p1712_p0 = scmp.ne.s32.totalorder %s2497_s2, %s1711_s1  ;;  %p1715_p1 = scmp.lt.u32.totalorder %s1711_s1, %s2497_s2 }
   0xc   :  { %v17_v30 = vld [vmem:[%s2495_s0 + $0x28] sm:$0xff]  ;;  %v18_v31 = vld [vmem:[%s2495_s0 + $0x30] sm:$0xff]  ;;  %v19_v32 = vld [vmem:[%s2495_s0 + $0x38] sm:$0xff] }
   0xd   :  { %1317 = vmatpush3.bf16.xpose.msk.msra.mxu0 %vm1754_vm1, %v1312_v6  ;;  %v20_v33 = vld [vmem:[%s2495_s0 + $0x40] sm:$0xff]  ;;  %v21_v34 = vld [vmem:[%s2495_s0 + $0x48] sm:$0xff]  ;;  %v22_v35 = vld [vmem:[%s2495_s0 + $0x50] sm:$0xff]  ;;  %p1717_p2 = pnand %p1715_p1, %p1712_p0 }
   0xe   :  { %1320 = vmatprep.subr.msk.bf16.mxu0 %vm1754_vm1, %v1318_v10  ;;  %v23_v36 = vld [vmem:[%s2495_s0 + $0x58] sm:$0xff]  ;;  %v24_v37 = vld [vmem:[%s2495_s0 + $0x60] sm:$0xff]  ;;  %v25_v38 = vld [vmem:[%s2495_s0 + $0x68] sm:$0xff] }
   0xf   :  { %v26_v39 = vld [vmem:[%s2495_s0 + $0x70] sm:$0xff]  ;;  %v27_v40 = vld [vmem:[%s2495_s0 + $0x78] sm:$0xff] }
  0x15   :  { %1323 = vmatpush3.bf16.xpose.msk.msra.mxu0 %vm1754_vm1, %v1318_v10 }
  0x16   :  { %1326 = vmatprep.subr.msk.bf16.mxu0 %vm1754_vm1, %v1324_v13 }
  0x1d   :  { %1329 = vmatpush3.bf16.xpose.msk.msra.mxu0 %vm1754_vm1, %v1324_v13 }
  0x1e   :  { %1332 = vmatprep.subr.msk.bf16.mxu0 %vm1754_vm1, %v1330_v16 }
  0x25   :  { %1335 = vmatpush3.bf16.xpose.msk.msra.mxu0 %vm1754_vm1, %v1330_v16 }
  0x26   :  { %1338 = vmatprep.subr.msk.bf16.mxu0 %vm1754_vm1, %v1336_v19 }
  0x2d   :  { %1341 = vmatpush3.bf16.xpose.msk.msra.mxu0 %vm1754_vm1, %v1336_v19 }
  0x2e   :  { %1344 = vmatprep.subr.msk.bf16.mxu0 %vm1754_vm1, %v1342_v22 }
  0x35   :  { %1347 = vmatpush3.bf16.xpose.msk.msra.mxu0 %vm1754_vm1, %v1342_v22 }
  0x36   :  { %1350 = vmatprep.subr.msk.bf16.mxu0 %vm1754_vm1, %v1348_v25 }
  0x3d   :  { %1353 = vmatpush3.bf16.xpose.msk.msra.mxu0 %vm1754_vm1, %v1348_v25 }
  0x44   :  { %1248 = vmatmul.mubr.msk.f32.vlgmr.msra.gmra.mrb[0].mxu0 %vm44_vm0, %v13_v26 }
  0x45   :  { %1250 = vmatprep.mubr.msk.f32.mxu0 %vm44_vm0, %v14_v27 }
  0x48   :  { %1251 = vmatmul.mubr.msk.f32.gmra.mrb[2].mxu0 %vm44_vm0, %v15_v28 }
  0x49   :  { %1253 = vmatprep.mubr.msk.f32.mxu0 %vm44_vm0, %v16_v29 }
  0x4c   :  { %1254 = vmatmul.mubr.msk.f32.gmra.mrb[4].mxu0 %vm44_vm0, %v17_v30 }
  0x4d   :  { %1256 = vmatprep.mubr.msk.f32.mxu0 %vm44_vm0, %v18_v31 }
  0x50   :  { %1257 = vmatmul.mubr.msk.f32.gmra.mrb[6].mxu0 %vm44_vm0, %v19_v32 }
  0x51   :  { %1259 = vmatprep.mubr.msk.f32.mxu0 %vm44_vm0, %v20_v33 }
  0x54   :  { %1260 = vmatmul.mubr.msk.f32.gmra.mrb[8].mxu0 %vm44_vm0, %v21_v34 }
  0x55   :  { %1262 = vmatprep.mubr.msk.f32.mxu0 %vm44_vm0, %v22_v35 }
  0x58   :  { %1263 = vmatmul.mubr.msk.f32.gmra.mrb[10].mxu0 %vm44_vm0, %v23_v36 }
  0x59   :  { %1265 = vmatprep.mubr.msk.f32.mxu0 %vm44_vm0, %v24_v37 }
  0x5c   :  { %1266 = vmatmul.mubr.msk.f32.gmra.mrb[12].mxu0 %vm44_vm0, %v25_v38 }
  0x5d   :  { %1268 = vmatprep.mubr.msk.f32.mxu0 %vm44_vm0, %v26_v39 }
  0x60   :  { %1269 = vmatmul.mubr.msk.f32.gmra.mrb[14].mxu0 %vm44_vm0, %v27_v40 }
 0x117   :  { %v1893_v41 = vpop.f32.mrb[0].mxu0 }
 0x118   :  { %v399_v42 = vmul.f32 %v1893_v41, %v1893_v41  ;;  %v1897_v43 = vpop.f32.mrb[1].mxu0 }
 0x119   :  { %v398_v44 = vmul.f32 %v1897_v43, %v1897_v43 }
 0x11a   :  { %v1901_v45 = vmul.f32 %v399_v42, %v399_v42 }
 0x11b   :  { %v1903_v46 = vmul.f32 %v398_v44, %v398_v44  ;;  %v1905_v47 = vpop.f32.mrb[2].mxu0  ;;  %v286_v44 = vmul.f32 4.0, %v1897_v43 }
 0x11c   :  { %v401_v48 = vmul.f32 %v1905_v47, %v1905_v47  ;;  %v1909_v49 = vpop.f32.mrb[3].mxu0 }
 0x11d   :  { %v400_v50 = vmul.f32 %v1909_v49, %v1909_v49  ;;  %430 = vadd.xlane.f32.xlu0 %v1903_v46  ;;  %v478_v51 = vadd.f32 %v1901_v45, %v1903_v46 }
 0x11e   :  { %v1916_v52 = vmul.f32 %v401_v48, %v401_v48 }
 0x11f   :  { %v1918_v53 = vmul.f32 %v400_v50, %v400_v50  ;;  %v1920_v54 = vpop.f32.mrb[4].mxu0  ;;  %v287_v50 = vmul.f32 4.0, %v1893_v41 }
 0x120   :  { %v403_v55 = vmul.f32 %v1920_v54, %v1920_v54  ;;  %v1924_v56 = vpop.f32.mrb[5].mxu0 }
 0x121   :  { %v479_v57 = vadd.f32 %v478_v51, %v1918_v53  ;;  %v402_v58 = vmul.f32 %v1924_v56, %v1924_v56  ;;  %432 = vadd.xlane.f32.xlu0 %v1901_v45  ;;  %434 = vadd.xlane.f32.xlu1 %v1918_v53  ;;  %v302_v51 = vmul.f32 1.442695, %v286_v44  ;;  %v290_v43 = vmul.f32 4.0, %v1924_v56 }
 0x122   :  { %v1931_v59 = vmul.f32 %v403_v55, %v403_v55 }
 0x123   :  { %v1933_v60 = vmul.f32 %v402_v58, %v402_v58  ;;  %v480_v61 = vadd.f32 %v479_v57, %v1916_v52  ;;  %v1936_v62 = vpop.f32.mrb[6].mxu0  ;;  %v304_v57 = vmul.f32 1.442695, %v287_v50  ;;  %1385 = vpow2.f32 %v302_v51 }
 0x124   :  { %v405_v63 = vmul.f32 %v1936_v62, %v1936_v62  ;;  %v1940_v0 = vpop.f32.mrb[7].mxu0  ;;  %v288_v58 = vmul.f32 4.0, %v1909_v49  ;;  %v291_v49 = vmul.f32 4.0, %v1920_v54 }
 0x125   :  { %v481_v1 = vadd.f32 %v480_v61, %v1933_v60  ;;  %v404_v2 = vmul.f32 %v1940_v0, %v1940_v0  ;;  %436 = vadd.xlane.f32.xlu1 %v1916_v52  ;;  %438 = vadd.xlane.f32.xlu0 %v1933_v60  ;;  %1387 = vpow2.f32 %v304_v57 }
 0x126   :  { %v1947_v3 = vmul.f32 %v405_v63, %v405_v63  ;;  %v1723_v63 = vmov 0.0|0.0  }
 0x127   :  { %v1949_v4 = vmul.f32 %v404_v2, %v404_v2  ;;  %v482_v5 = vadd.f32 %v481_v1, %v1931_v59  ;;  %v1952_v6 = vpop.f32.mrb[8].mxu0  ;;  %1354 = vmatprep.subr.bf16.mxu1 %v1723_v63  ;;  %v289_v1 = vmul.f32 4.0, %v1905_v47  ;;  %v306_v2 = vmul.f32 1.442695, %v288_v58 }
 0x128   :  { %v407_v7 = vmul.f32 %v1952_v6, %v1952_v6  ;;  %v1956_v8 = vpop.f32.mrb[9].mxu0  ;;  %v312_v47 = vmul.f32 1.442695, %v291_v49 }
 0x129   :  { %v483_v9 = vadd.f32 %v482_v5, %v1949_v4  ;;  %v406_v10 = vmul.f32 %v1956_v8, %v1956_v8  ;;  %440 = vadd.xlane.f32.xlu1 %v1931_v59  ;;  %442 = vadd.xlane.f32.xlu0 %v1949_v4  ;;  %1389 = vpow2.f32 %v306_v2 }
 0x12a   :  { %v1968_v14 = vmul.f32 %v407_v7, %v407_v7  ;;  %v308_v7 = vmul.f32 1.442695, %v289_v1 }
 0x12b   :  { %v1963_v11 = vmul.f32 %v406_v10, %v406_v10  ;;  %v484_v12 = vadd.f32 %v483_v9, %v1947_v3  ;;  %v1966_v13 = vpop.f32.mrb[10].mxu0  ;;  %v310_v9 = vmul.f32 1.442695, %v290_v43 }
 0x12c   :  { %v1970_v15 = vpop.f32.mrb[11].mxu0  ;;  %v409_v18 = vmul.f32 %v1966_v13, %v1966_v13 }
 0x12d   :  { %v485_v16 = vadd.f32 %v484_v12, %v1963_v11  ;;  %v408_v17 = vmul.f32 %v1970_v15, %v1970_v15  ;;  %444 = vadd.xlane.f32.xlu1 %v1947_v3  ;;  %446 = vadd.xlane.f32.xlu0 %v1963_v11  ;;  %v2027_v41 = vpop.eup %1385  ;;  %v292_v12 = vmul.f32 4.0, %v1940_v0 }
 0x12e   :  { %v1990_v24 = vmul.f32 %v409_v18, %v409_v18 }
 0x12f   :  { %v1979_v19 = vmul.f32 %v408_v17, %v408_v17  ;;  %v1981_v20 = vpop.f32.mrb[12].mxu0  ;;  %v486_v21 = vadd.f32 %v485_v16, %v1968_v14  ;;  %v2031_v10 = vpop.eup %1387  ;;  %v293_v17 = vmul.f32 4.0, %v1936_v62  ;;  %v314_v18 = vmul.f32 1.442695, %v292_v12 }
 0x130   :  { %v1984_v22 = vpop.f32.mrb[13].mxu0  ;;  %v411_v25 = vmul.f32 %v1981_v20, %v1981_v20  ;;  %v295_v62 = vmul.f32 4.0, %v1952_v6  ;;  %v297_v6 = vmul.f32 4.0, %v1966_v13  ;;  %v299_v2 = vmul.f32 4.0, %v1981_v20 }
 0x131   :  { %v410_v23 = vmul.f32 %v1984_v22, %v1984_v22  ;;  %448 = vadd.xlane.f32.xlu1 %v1968_v14  ;;  %450 = vadd.xlane.f32.xlu0 %v1979_v19  ;;  %v487_v28 = vadd.f32 %v486_v21, %v1979_v19  ;;  %v316_v0 = vmul.f32 1.442695, %v293_v17 }
 0x132   :  { %v2005_v31 = vmul.f32 %v411_v25, %v411_v25  ;;  %v294_v25 = vmul.f32 4.0, %v1956_v8  ;;  %v320_v8 = vmul.f32 1.442695, %v295_v62  ;;  %v324_v57 = vmul.f32 1.442695, %v297_v6 }
 0x133   :  { %v1994_v26 = vmul.f32 %v410_v23, %v410_v23  ;;  %v1996_v27 = vpop.f32.mrb[14].mxu0  ;;  %v488_v34 = vadd.f32 %v487_v28, %v1990_v24  ;;  %v2035_v16 = vpop.eup %1389 }
 0x134   :  { %v1999_v29 = vpop.f32.mrb[15].mxu0  ;;  %v413_v32 = vmul.f32 %v1996_v27, %v1996_v27 }
 0x135   :  { %v412_v30 = vmul.f32 %v1999_v29, %v1999_v29  ;;  %452 = vadd.xlane.f32.xlu1 %v1990_v24  ;;  %454 = vadd.xlane.f32.xlu0 %v1994_v26  ;;  %v489_v36 = vadd.f32 %v488_v34, %v1994_v26  ;;  %v318_v34 = vmul.f32 1.442695, %v294_v25  ;;  %v300_v12 = vmul.f32 4.0, %v1999_v29 }
 0x136   :  { %v2014_v35 = vmul.f32 %v413_v32, %v413_v32  ;;  %v301_v25 = vmul.f32 4.0, %v1996_v27 }
 0x137   :  { %v2009_v33 = vmul.f32 %v412_v30, %v412_v30  ;;  %v490_v37 = vadd.f32 %v489_v36, %v2005_v31 }
 0x139   :  { %456 = vadd.xlane.f32.xlu1 %v2005_v31  ;;  %458 = vadd.xlane.f32.xlu0 %v2009_v33  ;;  %v491_v38 = vadd.f32 %v490_v37, %v2009_v33 }
 0x13b   :  { %v492_v39 = vadd.f32 %v491_v38, %v2014_v35  ;;  %v296_v38 = vmul.f32 4.0, %v1970_v15  ;;  %v298_v15 = vmul.f32 4.0, %v1984_v22 }
 0x13d   :  { %460 = vadd.xlane.f32.xlu1 %v2014_v35  ;;  %v493_v40 = vrot.slane %v492_v39, 4  ;;  %v322_v44 = vmul.f32 1.442695, %v296_v38 }
 0x13f   :  { %v494_v42 = vadd.f32 %v493_v40, %v492_v39 }
 0x141   :  { %v495_v48 = vrot.slane %v494_v42, 2 }
 0x143   :  { %v496_v55 = vadd.f32 %v495_v48, %v494_v42 }
 0x145   :  { %v497_v61 = vrot.slane %v496_v55, 1 }
 0x147   :  { %v498_v5 = vadd.f32 %v497_v61, %v496_v55 }
 0x149   :  { %1391 = vrcp.f32 %v498_v5  ;;  %v326_v5 = vmul.f32 1.442695, %v298_v15 }
 0x14a   :  { %1393 = vpow2.f32 %v308_v7 }
 0x14b   :  { %1395 = vpow2.f32 %v310_v9 }
 0x14c   :  { %1397 = vpow2.f32 %v312_v47  ;;  %v328_v47 = vmul.f32 1.442695, %v299_v2 }
 0x14d   :  { %1399 = vpow2.f32 %v314_v18 }
 0x14e   :  { %1401 = vpow2.f32 %v316_v0 }
 0x153   :  { %v2037_v56 = vpop.eup %1391 }
 0x154   :  { %v2041_v54 = vpop.eup %1393  ;;  %v618_v21 = vmul.f32 %v2037_v56, %v1903_v46  ;;  %v619_v23 = vmul.f32 %v2037_v56, %v1901_v45  ;;  %v620_v36 = vmul.f32 %v2037_v56, %v1918_v53  ;;  %v621_v39 = vmul.f32 %v2037_v56, %v1916_v52 }
 0x155   :  { %v2049_v28 = vpop.eup %1395  ;;  %v622_v48 = vmul.f32 %v2037_v56, %v1933_v60  ;;  %v623_v61 = vmul.f32 %v2037_v56, %v1931_v59  ;;  %v624_v7 = vmul.f32 %v2037_v56, %v1949_v4  ;;  %v625_v17 = vmul.f32 %v2037_v56, %v1947_v3 }
 0x156   :  { %v634_v30 = vmul.f32 1.442695, %v618_v21  ;;  %v636_v32 = vmul.f32 1.442695, %v619_v23  ;;  %v2055_v37 = vpop.eup %1397  ;;  %v638_v40 = vmul.f32 1.442695, %v620_v36  ;;  %v626_v29 = vmul.f32 %v2037_v56, %v1963_v11 }
 0x157   :  { %v2061_v42 = vpop.eup %1399  ;;  %v640_v50 = vmul.f32 1.442695, %v621_v39  ;;  %v642_v13 = vmul.f32 1.442695, %v622_v48  ;;  %v644_v43 = vmul.f32 1.442695, %v623_v61  ;;  %v627_v27 = vmul.f32 %v2037_v56, %v1968_v14 }
 0x158   :  { %1403 = vpow2.f32 %v634_v30  ;;  %v2067_v51 = vpop.eup %1401  ;;  %v646_v18 = vmul.f32 1.442695, %v624_v7  ;;  %v1725_v21 = vmov 0.0   ;;  %v330_v30 = vmul.f32 1.442695, %v300_v12 }
 0x159   :  { %1405 = vpow2.f32 %v636_v32  ;;  %1303 = vmatprep.mubr.msk.f32.mxu1 %vm1724_vm2, %v1725_v21  ;;  %v648_v62 = vmul.f32 1.442695, %v625_v17  ;;  %v628_v48 = vmul.f32 %v2037_v56, %v1979_v19  ;;  %v631_v12 = vmul.f32 %v2037_v56, %v2005_v31 }
 0x15a   :  { %1407 = vpow2.f32 %v318_v34  ;;  %v632_v21 = vmul.f32 %v2037_v56, %v2009_v33 }
 0x15b   :  { %1409 = vpow2.f32 %v320_v8  ;;  %v332_v8 = vmul.f32 1.442695, %v301_v25  ;;  %v654_v61 = vmul.f32 1.442695, %v628_v48 }
 0x15c   :  { %1411 = vpow2.f32 %v638_v40  ;;  %v650_v40 = vmul.f32 1.442695, %v626_v29  ;;  %v633_v29 = vmul.f32 %v2037_v56, %v2014_v35 }
 0x15d   :  { %1413 = vpow2.f32 %v322_v44 }
 0x15e   :  { %1415 = vpow2.f32 %v640_v50  ;;  %v652_v50 = vmul.f32 1.442695, %v627_v27 }
 0x15f   :  { %1417 = vpow2.f32 %v324_v57 }
 0x160   :  { %1419 = vpow2.f32 %v642_v13 }
 0x161   :  { %1421 = vpow2.f32 %v326_v5 }
 0x162   :  { %v1404_v55 = vpop.eup %1403  ;;  %1423 = vpow2.f32 %v644_v43 }
 0x163   :  { %v1406_v58 = vpop.eup %1405  ;;  %1425 = vpow2.f32 %v328_v47 }
 0x164   :  { %v2073_v1 = vpop.eup %1407  ;;  %v666_v22 = vadd.f32 %v1406_v58, %v1404_v55  ;;  %1427 = vpow2.f32 %v646_v18  ;;  %v629_v58 = vmul.f32 %v2037_v56, %v1990_v24 }
 0x165   :  { %v2079_v49 = vpop.eup %1409  ;;  %1429 = vpow2.f32 %v330_v30 }
 0x166   :  { %350 = vxpose.xlu0.b32.start [1/16] %v2027_v41, 128  ;;  %v1412_v9 = vpop.eup %1411  ;;  %1431 = vpow2.f32 %v648_v62  ;;  %v656_v7 = vmul.f32 1.442695, %v629_v58  ;;  %v662_v62 = vmul.f32 1.442695, %v632_v21 }
 0x167   :  { %v667_v20 = vadd.f32 %v1412_v9, %v666_v22  ;;  %v2085_v23 = vpop.eup %1413  ;;  %1433 = vpow2.f32 %v332_v8  ;;  %v630_v22 = vmul.f32 %v2037_v56, %v1994_v26 }
 0x168   :  { %v1416_v0 = vpop.eup %1415  ;;  %1435 = vpow2.f32 %v650_v40  ;;  %v664_v40 = vmul.f32 1.442695, %v633_v29 }
 0x169   :  { %v668_v32 = vadd.f32 %v1416_v0, %v667_v20  ;;  %v2091_v34 = vpop.eup %1417  ;;  %1437 = vpow2.f32 %v652_v50  ;;  %v658_v20 = vmul.f32 1.442695, %v630_v22  ;;  %v660_v0 = vmul.f32 1.442695, %v631_v12 }
 0x16a   :  { %351 = vxpose.xlu0.b32.cont [2/16] %v2031_v10, 128  ;;  %v1420_v36 = vpop.eup %1419  ;;  %1439 = vpow2.f32 %v654_v61 }
 0x16b   :  { %v669_v38 = vadd.f32 %v1420_v36, %v668_v32  ;;  %v2094_v39 = vpop.eup %1421  ;;  %1441 = vpow2.f32 %v656_v7 }
 0x16c   :  { %v1424_v6 = vpop.eup %1423  ;;  %1443 = vpow2.f32 %v658_v20 }
 0x16d   :  { %v670_v44 = vadd.f32 %v1424_v6, %v669_v38  ;;  %v2101_v15 = vpop.eup %1425 }
 0x16e   :  { %352 = vxpose.xlu0.b32.cont [3/16] %v2035_v16, 128  ;;  %v1428_v55 = vpop.eup %1427 }
 0x16f   :  { %v671_v57 = vadd.f32 %v1428_v55, %v670_v44  ;;  %v2106_v13 = vpop.eup %1429 }
 0x170   :  { %v1432_v2 = vpop.eup %1431 }
 0x171   :  { %v672_v5 = vadd.f32 %v1432_v2, %v671_v57  ;;  %v2111_v43 = vpop.eup %1433 }
 0x172   :  { %353 = vxpose.xlu0.b32.cont [4/16] %v2041_v54, 128  ;;  %v1436_v9 = vpop.eup %1435 }
 0x173   :  { %v673_v47 = vadd.f32 %v1436_v9, %v672_v5  ;;  %v1438_v17 = vpop.eup %1437 }
 0x174   :  { %v1440_v25 = vpop.eup %1439 }
 0x175   :  { %v674_v18 = vadd.f32 %v1438_v17, %v673_v47  ;;  %v1442_v36 = vpop.eup %1441 }
 0x176   :  { %354 = vxpose.xlu0.b32.cont [5/16] %v2049_v28, 128  ;;  %v1444_v6 = vpop.eup %1443 }
 0x177   :  { %v675_v32 = vadd.f32 %v1440_v25, %v674_v18 }
 0x179   :  { %v676_v27 = vadd.f32 %v1442_v36, %v675_v32 }
 0x17a   :  { %355 = vxpose.xlu0.b32.cont [6/16] %v2055_v37, 128 }
 0x17b   :  { %v677_v48 = vadd.f32 %v1444_v6, %v676_v27 }
 0x17e   :  { %356 = vxpose.xlu0.b32.cont [7/16] %v2061_v42, 128 }
 0x182   :  { %357 = vxpose.xlu0.b32.cont [8/16] %v2067_v51, 128 }
 0x186   :  { %358 = vxpose.xlu0.b32.cont [9/16] %v2073_v1, 128 }
 0x18a   :  { %359 = vxpose.xlu0.b32.cont [10/16] %v2079_v49, 128 }
 0x18e   :  { %360 = vxpose.xlu0.b32.cont [11/16] %v2085_v23, 128 }
 0x192   :  { %361 = vxpose.xlu0.b32.cont [12/16] %v2091_v34, 128 }
 0x196   :  { %362 = vxpose.xlu0.b32.cont [13/16] %v2094_v39, 128 }
 0x19a   :  { %363 = vxpose.xlu0.b32.cont [14/16] %v2101_v15, 128 }
 0x19e   :  { %364 = vxpose.xlu0.b32.cont [15/16] %v2106_v13, 128 }
 0x1a2   :  { %365 = vxpose.xlu0.b32.end [16/16] %v2111_v43, 128 }
 0x1aa   :  { %v431_v30 = vpop.xlane.xlu0 %430 }
 0x1ab   :  { %1445 = vrcp.f32 %v431_v30 }
 0x1ac   :  { %1447 = vpow2.f32 %v660_v0 }
 0x1ae   :  { %v433_v8 = vpop.xlane.xlu0 %432  ;;  %v435_v38 = vpop.xlane.xlu1 %434 }
 0x1af   :  { %1449 = vrcp.f32 %v433_v8 }
 0x1b0   :  { %1451 = vpow2.f32 %v662_v62 }
 0x1b1   :  { %1453 = vrcp.f32 %v435_v38 }
 0x1b2   :  { %v437_v44 = vpop.xlane.xlu1 %436  ;;  %v439_v56 = vpop.xlane.xlu0 %438 }
 0x1b3   :  { %1455 = vrcp.f32 %v437_v44 }
 0x1b4   :  { %1457 = vpow2.f32 %v664_v40 }
 0x1b5   :  { %v1446_v50 = vpop.eup %1445 }
 0x1b6   :  { %v1448_v55 = vpop.eup %1447  ;;  %v500_v57 = vmul.f32 %v1446_v50, %v1903_v46  ;;  %v441_v58 = vpop.xlane.xlu1 %440 }
 0x1b7   :  { %v678_v61 = vadd.f32 %v1448_v55, %v677_v48  ;;  %1459 = vrcp.f32 %v441_v58  ;;  %v443_v0 = vpop.xlane.xlu0 %442 }
 0x1b8   :  { %v516_v5 = vmul.f32 1.442695, %v500_v57  ;;  %1461 = vrcp.f32 %v439_v56 }
 0x1b9   :  { %v1450_v2 = vpop.eup %1449 }
 0x1ba   :  { %v1452_v22 = vpop.eup %1451  ;;  %v501_v7 = vmul.f32 %v1450_v2, %v1901_v45  ;;  %v445_v20 = vpop.xlane.xlu1 %444  ;;  %1463 = vpow2.f32 %v516_v5 }
 0x1bb   :  { %v1454_v9 = vpop.eup %1453  ;;  %v679_v47 = vadd.f32 %v1452_v22, %v678_v61 }
 0x1bc   :  { %v518_v12 = vmul.f32 1.442695, %v501_v7  ;;  %v502_v21 = vmul.f32 %v1454_v9, %v1918_v53  ;;  %v447_v53 = vpop.xlane.xlu0 %446 }
 0x1bd   :  { %v1456_v17 = vpop.eup %1455 }
 0x1be   :  { %v1458_v18 = vpop.eup %1457  ;;  %v503_v46 = vmul.f32 %v1456_v17, %v1916_v52  ;;  %1465 = vpow2.f32 %v518_v12  ;;  %v520_v29 = vmul.f32 1.442695, %v502_v21  ;;  %v449_v8 = vpop.xlane.xlu1 %448 }
 0x1bf   :  { %v680_v25 = vadd.f32 %v1458_v18, %v679_v47  ;;  %1467 = vrcp.f32 %v445_v20 }
 0x1c0   :  { %v522_v30 = vmul.f32 1.442695, %v503_v46  ;;  %1469 = vrcp.f32 %v443_v0  ;;  %v451_v61 = vpop.xlane.xlu0 %450 }
 0x1c1   :  { %v1460_v32 = vpop.eup %1459  ;;  %v681_v62 = vrot.slane %v680_v25, 4 }
 0x1c2   :  { %v1462_v45 = vpop.eup %1461  ;;  %1471 = vpow2.f32 %v522_v30  ;;  %v505_v36 = vmul.f32 %v1460_v32, %v1931_v59  ;;  %v453_v56 = vpop.xlane.xlu1 %452 }
 0x1c3   :  { %1473 = vpow2.f32 %v520_v29  ;;  %v504_v38 = vmul.f32 %v1462_v45, %v1933_v60  ;;  %v682_v52 = vadd.f32 %v681_v62, %v680_v25 }
 0x1c4   :  { %v1464_v27 = vpop.eup %1463  ;;  %1475 = vrcp.f32 %v449_v8  ;;  %v526_v6 = vmul.f32 1.442695, %v505_v36  ;;  %v455_v21 = vpop.xlane.xlu0 %454 }
 0x1c5   :  { %1477 = vrcp.f32 %v447_v53  ;;  %v524_v50 = vmul.f32 1.442695, %v504_v38  ;;  %v683_v57 = vrot.slane %v682_v52, 2 }
 0x1c6   :  { %1479 = vpow2.f32 %v526_v6  ;;  %v457_v17 = vpop.xlane.xlu1 %456 }
 0x1c7   :  { %1481 = vpow2.f32 %v524_v50  ;;  %v684_v2 = vadd.f32 %v683_v57, %v682_v52 }
 0x1c8   :  { %v1466_v40 = vpop.eup %1465  ;;  %1483 = vrcp.f32 %v453_v56  ;;  %v459_v8 = vpop.xlane.xlu0 %458 }
 0x1c9   :  { %v1468_v44 = vpop.eup %1467  ;;  %v1355_v48 = vpack.c.bf16 %v1466_v40, %v1464_v27  ;;  %1485 = vrcp.f32 %v451_v61  ;;  %v685_v20 = vrot.slane %v684_v2, 1 }
 0x1ca   :  { %v1470_v55 = vpop.eup %1469  ;;  %v507_v59 = vmul.f32 %v1468_v44, %v1947_v3  ;;  %v461_v62 = vpop.xlane.xlu1 %460 }
 0x1cb   :  { %1356 = vmatpush3.bf16.xpose.msra.mxu1 %v1355_v48  ;;  %v506_v58 = vmul.f32 %v1470_v55, %v1949_v4  ;;  %v686_v46 = vadd.f32 %v685_v20, %v684_v2 }
 0x1cc   :  { %1357 = vmatprep.subr.bf16.mxu1 %v1723_v63  ;;  %v1472_v60 = vpop.eup %1471  ;;  %v530_v22 = vmul.f32 1.442695, %v507_v59 }
 0x1cd   :  { %v1474_v5 = vpop.eup %1473  ;;  %v528_v47 = vmul.f32 1.442695, %v506_v58 }
 0x1ce   :  { %v1476_v7 = vpop.eup %1475  ;;  %v1358_v9 = vpack.c.bf16 %v1472_v60, %v1474_v5  ;;  %1487 = vpow2.f32 %v530_v22 }
 0x1cf   :  { %v1478_v12 = vpop.eup %1477  ;;  %v509_v3 = vmul.f32 %v1476_v7, %v1968_v14  ;;  %1489 = vpow2.f32 %v528_v47 }
 0x1d0   :  { %v1480_v18 = vpop.eup %1479  ;;  %v508_v4 = vmul.f32 %v1478_v12, %v1963_v11  ;;  %1491 = vrcp.f32 %v457_v17 }
 0x1d1   :  { %v1482_v0 = vpop.eup %1481  ;;  %v534_v25 = vmul.f32 1.442695, %v509_v3  ;;  %1493 = vrcp.f32 %v455_v21 }
 0x1d2   :  { %v1484_v30 = vpop.eup %1483  ;;  %v1361_v32 = vpack.c.bf16 %v1480_v18, %v1482_v0  ;;  %v532_v29 = vmul.f32 1.442695, %v508_v4  ;;  %1495 = vrcp.f32 %v686_v46 }
 0x1d3   :  { %1359 = vmatpush3.bf16.xpose.msra.mxu1 %v1358_v9  ;;  %v1486_v45 = vpop.eup %1485  ;;  %1497 = vpow2.f32 %v534_v25  ;;  %v511_v14 = vmul.f32 %v1484_v30, %v1990_v24 }
 0x1d4   :  { %1360 = vmatprep.subr.bf16.mxu1 %v1723_v63  ;;  %1499 = vpow2.f32 %v532_v29  ;;  %v510_v11 = vmul.f32 %v1486_v45, %v1979_v19 }
 0x1d5   :  { %1501 = vrcp.f32 %v461_v62  ;;  %v538_v53 = vmul.f32 1.442695, %v511_v14 }
 0x1d6   :  { %1503 = vrcp.f32 %v459_v8  ;;  %v536_v40 = vmul.f32 1.442695, %v510_v11 }
 0x1d7   :  { %1505 = vpow2.f32 %v538_v53 }
 0x1d8   :  { %v1488_v36 = vpop.eup %1487  ;;  %1507 = vpow2.f32 %v536_v40 }
 0x1d9   :  { %v1490_v38 = vpop.eup %1489 }
 0x1da   :  { %v1492_v27 = vpop.eup %1491  ;;  %v1364_v52 = vpack.c.bf16 %v1488_v36, %v1490_v38 }
 0x1db   :  { %1362 = vmatpush3.bf16.xpose.msra.mxu1 %v1361_v32  ;;  %v1494_v6 = vpop.eup %1493  ;;  %v513_v24 = vmul.f32 %v1492_v27, %v2005_v31 }
 0x1dc   :  { %1363 = vmatprep.subr.bf16.mxu1 %v1723_v63  ;;  %v2137_v44 = vpop.eup %1495  ;;  %v512_v19 = vmul.f32 %v1494_v6, %v1994_v26 }
 0x1dd   :  { %v1498_v48 = vpop.eup %1497  ;;  %v542_v59 = vmul.f32 1.442695, %v513_v24 }
 0x1de   :  { %v1500_v57 = vpop.eup %1499  ;;  %v540_v61 = vmul.f32 1.442695, %v512_v19 }
 0x1df   :  { %v1502_v56 = vpop.eup %1501  ;;  %v1367_v58 = vpack.c.bf16 %v1498_v48, %v1500_v57 }
 0x1e0   :  { %v1504_v2 = vpop.eup %1503  ;;  %v515_v26 = vmul.f32 %v1502_v56, %v2014_v35 }
 0x1e1   :  { %v1506_v7 = vpop.eup %1505  ;;  %v514_v9 = vmul.f32 %v1504_v2, %v2009_v33 }
 0x1e2   :  { %v1508_v20 = vpop.eup %1507  ;;  %v546_v3 = vmul.f32 1.442695, %v515_v26 }
 0x1e3   :  { %1365 = vmatpush3.bf16.xpose.msra.mxu1 %v1364_v52  ;;  %v1370_v18 = vpack.c.bf16 %v1506_v7, %v1508_v20  ;;  %v544_v4 = vmul.f32 1.442695, %v514_v9 }
 0x1e4   :  { %1366 = vmatprep.subr.bf16.mxu1 %v1723_v63 }
 0x1e6   :  { %v366_v50 = vpop.trf.xlu0 }
 0x1e7   :  { %v2141_v55 = vmul.f32 %v2137_v44, %v366_v50 }
 0x1e9   :  { %v789_v60 = vmul.f32 1.442695, %v2141_v55 }
 0x1ea   :  { %v367_v31 = vpop.trf.xlu0 }
 0x1eb   :  { %1509 = vpow2.f32 %v789_v60  ;;  %v2145_v5 = vmul.f32 %v2137_v44, %v367_v31  ;;  %1368 = vmatpush3.bf16.xpose.msra.mxu1 %v1367_v58  ;;  %v1726_v58 = vmov 1.0  }
 0x1ec   :  { %1511 = vpow2.f32 %v542_v59  ;;  %1369 = vmatprep.subr.bf16.mxu1 %v1723_v63 }
 0x1ed   :  { %v791_v22 = vmul.f32 1.442695, %v2145_v5  ;;  %1513 = vpow2.f32 %v540_v61 }
 0x1ee   :  { %v368_v47 = vpop.trf.xlu0 }
 0x1ef   :  { %1515 = vpow2.f32 %v791_v22  ;;  %v2152_v12 = vmul.f32 %v2137_v44, %v368_v47 }
 0x1f1   :  { %v793_v17 = vmul.f32 1.442695, %v2152_v12 }
 0x1f2   :  { %v369_v35 = vpop.trf.xlu0 }
 0x1f3   :  { %1517 = vpow2.f32 %v793_v17  ;;  %v2156_v21 = vmul.f32 %v2137_v44, %v369_v35  ;;  %1371 = vmatpush3.bf16.xpose.msra.mxu1 %v1370_v18 }
 0x1f4   :  { %1519 = vpow2.f32 %v546_v3  ;;  %1372 = vmatprep.subr.bf16.mxu1 %v1723_v63 }
 0x1f5   :  { %v2159_v33 = vpop.eup %1509  ;;  %v795_v46 = vmul.f32 1.442695, %v2156_v21  ;;  %1521 = vpow2.f32 %v544_v4 }
 0x1f6   :  { %v1512_v0 = vpop.eup %1511  ;;  %853 = vadd.xlane.f32.xlu1 %v2159_v33  ;;  %v370_v25 = vpop.trf.xlu0 }
 0x1f7   :  { %1523 = vpow2.f32 %v795_v46  ;;  %v2164_v30 = vmul.f32 %v2137_v44, %v370_v25  ;;  %v1514_v32 = vpop.eup %1513 }
 0x1f8   :  { %v1373_v14 = vpack.c.bf16 %v1512_v0, %v1514_v32 }
 0x1f9   :  { %v2166_v29 = vpop.eup %1515  ;;  %v797_v45 = vmul.f32 1.442695, %v2164_v30 }
 0x1fa   :  { %855 = vadd.xlane.f32.xlu1 %v2166_v29  ;;  %v371_v62 = vpop.trf.xlu0 }
 0x1fb   :  { %1525 = vpow2.f32 %v797_v45  ;;  %v2171_v36 = vmul.f32 %v2137_v44, %v371_v62  ;;  %1374 = vmatpush3.bf16.xpose.msra.mxu1 %v1373_v14 }
 0x1fc   :  { %1375 = vmatprep.subr.bf16.mxu1 %v1723_v63 }
 0x1fd   :  { %v2174_v11 = vpop.eup %1517  ;;  %v799_v8 = vmul.f32 1.442695, %v2171_v36 }
 0x1fe   :  { %v1520_v38 = vpop.eup %1519  ;;  %857 = vadd.xlane.f32.xlu1 %v2174_v11  ;;  %v372_v53 = vpop.trf.xlu0 }
 0x1ff   :  { %1527 = vpow2.f32 %v799_v8  ;;  %v2179_v27 = vmul.f32 %v2137_v44, %v372_v53  ;;  %v1522_v52 = vpop.eup %1521 }
 0x200   :  { %v1376_v24 = vpack.c.bf16 %v1520_v38, %v1522_v52 }
 0x201   :  { %v2181_v40 = vpop.eup %1523  ;;  %v801_v6 = vmul.f32 1.442695, %v2179_v27 }
 0x202   :  { %859 = vadd.xlane.f32.xlu1 %v2181_v40  ;;  %v373_v63 = vpop.trf.xlu0 }
 0x203   :  { %1529 = vpow2.f32 %v801_v6  ;;  %v2186_v48 = vmul.f32 %v2137_v44, %v373_v63  ;;  %1377 = vmatpush3.bf16.xpose.msra.mxu1 %v1376_v24 }
 0x205   :  { %v2188_v19 = vpop.eup %1525  ;;  %v803_v50 = vmul.f32 1.442695, %v2186_v48 }
 0x206   :  { %861 = vadd.xlane.f32.xlu1 %v2188_v19  ;;  %v374_v57 = vpop.trf.xlu0 }
 0x207   :  { %1531 = vpow2.f32 %v803_v50  ;;  %v2193_v59 = vmul.f32 %v2137_v44, %v374_v57  ;;  %v705_v50 = vlaneseq }
 0x209   :  { %v2195_v56 = vpop.eup %1527  ;;  %v805_v60 = vmul.f32 1.442695, %v2193_v59 }
 0x20a   :  { %1304 = vmatmul.mubr.f32.vlgmr.msra.gmra.mrb[0].mxu1 %v1726_v58  ;;  %863 = vadd.xlane.f32.xlu1 %v2195_v56  ;;  %v375_v61 = vpop.trf.xlu0 }
 0x20b   :  { %1533 = vpow2.f32 %v805_v60  ;;  %v2200_v31 = vmul.f32 %v2137_v44, %v375_v61  ;;  %v706_v60 = vshrl.u32 %v705_v50, 7 }
 0x20d   :  { %2529 = vst [vmem:[#allocation7_spill] sm:$0xff] %v2200_v31  ;;  %v2202_v2 = vpop.eup %1529  ;;  %v807_v26 = vmul.f32 1.442695, %v2200_v31  ;;  %v707_v58 = vsub.s32 0, %v706_v60 }
 0x20e   :  { %865 = vadd.xlane.f32.xlu1 %v2202_v2  ;;  %v376_v22 = vpop.trf.xlu0 }
 0x20f   :  { %1535 = vpow2.f32 %v807_v26  ;;  %v2207_v7 = vmul.f32 %v2137_v44, %v376_v22 }
 0x211   :  { %2530 = vst [vmem:[#allocation8_spill] sm:$0xff] %v2207_v7  ;;  %v2209_v9 = vpop.eup %1531  ;;  %v809_v47 = vmul.f32 1.442695, %v2207_v7 }
 0x212   :  { %867 = vadd.xlane.f32.xlu1 %v2209_v9  ;;  %v377_v20 = vpop.trf.xlu0 }
 0x213   :  { %1537 = vpow2.f32 %v809_v47  ;;  %v2214_v3 = vmul.f32 %v2137_v44, %v377_v20 }
 0x215   :  { %2531 = vst [vmem:[#allocation9_spill] sm:$0xff] %v2214_v3  ;;  %v2216_v17 = vpop.eup %1533  ;;  %v811_v18 = vmul.f32 1.442695, %v2214_v3 }
 0x216   :  { %869 = vadd.xlane.f32.xlu1 %v2216_v17  ;;  %v378_v4 = vpop.trf.xlu0 }
 0x217   :  { %1539 = vpow2.f32 %v811_v18  ;;  %v2221_v35 = vmul.f32 %v2137_v44, %v378_v4 }
 0x219   :  { %2532 = vst [vmem:[#allocation10_spill] sm:$0xff] %v2221_v35  ;;  %v2223_v46 = vpop.eup %1535  ;;  %v813_v0 = vmul.f32 1.442695, %v2221_v35 }
 0x21a   :  { %2533 = vst [vmem:[#allocation11_spill] sm:$0xff] %v2223_v46  ;;  %871 = vadd.xlane.f32.xlu1 %v2223_v46  ;;  %v379_v25 = vpop.trf.xlu0 }
 0x21b   :  { %1541 = vpow2.f32 %v813_v0  ;;  %v2228_v32 = vmul.f32 %v2137_v44, %v379_v25 }
 0x21d   :  { %2534 = vst [vmem:[#allocation12_spill] sm:$0xff] %v2228_v32  ;;  %v2230_v45 = vpop.eup %1537  ;;  %v815_v14 = vmul.f32 1.442695, %v2228_v32 }
 0x21e   :  { %2535 = vst [vmem:[#allocation13_spill] sm:$0xff] %v2230_v45  ;;  %873 = vadd.xlane.f32.xlu1 %v2230_v45  ;;  %v380_v62 = vpop.trf.xlu0 }
 0x21f   :  { %1543 = vpow2.f32 %v815_v14  ;;  %v2235_v8 = vmul.f32 %v2137_v44, %v380_v62 }
 0x221   :  { %2536 = vst [vmem:[#allocation14_spill] sm:$0xff] %v2235_v8  ;;  %v2237_v38 = vpop.eup %1539  ;;  %v817_v53 = vmul.f32 1.442695, %v2235_v8 }
 0x222   :  { %2537 = vst [vmem:[#allocation15_spill] sm:$0xff] %v2237_v38  ;;  %875 = vadd.xlane.f32.xlu1 %v2237_v38  ;;  %v381_v8 = vpop.trf.xlu0 }
 0x223   :  { %1545 = vpow2.f32 %v817_v53 }
 0x225   :  { %v2241_v52 = vpop.eup %1541 }
 0x226   :  { %2538 = vst [vmem:[#allocation16_spill] sm:$0xff] %v2241_v52  ;;  %877 = vadd.xlane.f32.xlu1 %v2241_v52 }
 0x229   :  { %v2244_v6 = vpop.eup %1543 }
 0x22a   :  { %2539 = vst [vmem:[#allocation17_spill] sm:$0xff] %v2244_v6  ;;  %879 = vadd.xlane.f32.xlu0 %v2244_v6 }
 0x22d   :  { %v2247_v24 = vpop.eup %1545 }
 0x22e   :  { %2540 = vst [vmem:[#allocation18_spill] sm:$0xff] %v2247_v24  ;;  %881 = vadd.xlane.f32.xlu1 %v2247_v24 }
 0x2dd   :  { %v614_v63 = vpop.f32.mrb[0].mxu1 }
 0x2de   :  { %1547 = vrcp.f32 %v614_v63  ;;  %v1305_v57 = vpop.f32.mrb[1].mxu1 }
 0x2e8   :  { %v1548_v61 = vpop.eup %1547 }
 0x2e9   :  { %v2250_v26 = vrot.slane %v1548_v61, %v707_v58 }
 0x2eb   :  { %v2254_v22 = vmul.f32 %v2027_v41, %v2250_v26  ;;  %v2258_v47 = vmul.f32 %v2031_v10, %v2250_v26  ;;  %v2264_v4 = vmul.f32 %v2035_v16, %v2250_v26  ;;  %v2269_v41 = vmul.f32 %v2041_v54, %v2250_v26 }
 0x2ec   :  { %v2274_v25 = vmul.f32 %v2049_v28, %v2250_v26  ;;  %v2282_v62 = vmul.f32 %v2055_v37, %v2250_v26  ;;  %v2290_v28 = vmul.f32 %v2061_v42, %v2250_v26  ;;  %v2298_v37 = vmul.f32 %v2067_v51, %v2250_v26 }
 0x2ed   :  { %v757_v20 = vmul.f32 1.442695, %v2254_v22  ;;  %v759_v18 = vmul.f32 1.442695, %v2258_v47  ;;  %v761_v0 = vmul.f32 1.442695, %v2264_v4  ;;  %v2306_v42 = vmul.f32 %v2073_v1, %v2250_v26 }
 0x2ee   :  { %v763_v10 = vmul.f32 1.442695, %v2269_v41  ;;  %v765_v16 = vmul.f32 1.442695, %v2274_v25  ;;  %v767_v53 = vmul.f32 1.442695, %v2282_v62  ;;  %v2314_v51 = vmul.f32 %v2079_v49, %v2250_v26 }
 0x2ef   :  { %1549 = vpow2.f32 %v757_v20  ;;  %v769_v50 = vmul.f32 1.442695, %v2290_v28  ;;  %v771_v60 = vmul.f32 1.442695, %v2298_v37  ;;  %v773_v61 = vmul.f32 1.442695, %v2306_v42 }
 0x2f0   :  { %1551 = vpow2.f32 %v759_v18  ;;  %2541 = vst [vmem:[#allocation19_spill] sm:$0xff] %v2314_v51  ;;  %v775_v18 = vmul.f32 1.442695, %v2314_v51  ;;  %v2322_v1 = vmul.f32 %v2085_v23, %v2250_v26  ;;  %v2330_v49 = vmul.f32 %v2091_v34, %v2250_v26 }
 0x2f1   :  { %1553 = vpow2.f32 %v761_v0  ;;  %v2338_v23 = vmul.f32 %v2094_v39, %v2250_v26  ;;  %v2346_v34 = vmul.f32 %v2101_v15, %v2250_v26  ;;  %v2354_v39 = vmul.f32 %v2106_v13, %v2250_v26 }
 0x2f2   :  { %1555 = vpow2.f32 %v763_v10  ;;  %2542 = vst [vmem:[#allocation20_spill] sm:$0xff] %v2322_v1  ;;  %v777_v10 = vmul.f32 1.442695, %v2322_v1  ;;  %2543 = vst [vmem:[#allocation21_spill] sm:$0xff] %v2330_v49  ;;  %v2362_v15 = vmul.f32 %v2111_v43, %v2250_v26 }
 0x2f3   :  { %1557 = vpow2.f32 %v765_v16  ;;  %2544 = vst [vmem:[#allocation22_spill] sm:$0xff] %v2338_v23  ;;  %2545 = vst [vmem:[#allocation23_spill] sm:$0xff] %v2346_v34 }
 0x2f4   :  { %1559 = vpow2.f32 %v767_v53  ;;  %v779_v53 = vmul.f32 1.442695, %v2330_v49  ;;  %2547 = vst [vmem:[#allocation25_spill] sm:$0xff] %v2354_v39  ;;  %2549 = vst [vmem:[#allocation27_spill] sm:$0xff] %v2362_v15  ;;  %v787_v13 = vmul.f32 1.442695, %v2362_v15 }
 0x2f5   :  { %1561 = vpow2.f32 %v769_v50 }
 0x2f6   :  { %1563 = vpow2.f32 %v771_v60  ;;  %v781_v60 = vmul.f32 1.442695, %v2338_v23 }
 0x2f7   :  { %1565 = vpow2.f32 %v773_v61 }
 0x2f8   :  { %1567 = vpow2.f32 %v775_v18  ;;  %v783_v18 = vmul.f32 1.442695, %v2346_v34 }
 0x2f9   :  { %v2276_v14 = vpop.eup %1549  ;;  %1569 = vpow2.f32 %v777_v10 }
 0x2fa   :  { %821 = vadd.xlane.f32.xlu1 %v2276_v14  ;;  %v2284_v54 = vpop.eup %1551  ;;  %1571 = vpow2.f32 %v779_v53  ;;  %v785_v53 = vmul.f32 1.442695, %v2354_v39 }
 0x2fb   :  { %v2292_v63 = vpop.eup %1553  ;;  %1573 = vpow2.f32 %v781_v60  ;;  %v2368_v60 = vmul.f32 %v2137_v44, %v381_v8  ;;  %v854_v8 = vpop.xlane.xlu1 %853 }
 0x2fc   :  { %v2300_v57 = vpop.eup %1555  ;;  %1575 = vpow2.f32 %v783_v18 }
 0x2fd   :  { %v2308_v58 = vpop.eup %1557  ;;  %2551 = vst [vmem:[#allocation29_spill] sm:$0xff] %v2368_v60  ;;  %1577 = vpow2.f32 %v785_v53  ;;  %v819_v18 = vmul.f32 1.442695, %v2368_v60 }
 0x2fe   :  { %823 = vadd.xlane.f32.xlu1 %v2284_v54  ;;  %v2316_v20 = vpop.eup %1559  ;;  %1579 = vpow2.f32 %v787_v13 }
 0x2ff   :  { %v2324_v0 = vpop.eup %1561  ;;  %1581 = vpow2.f32 %v819_v18  ;;  %v856_v15 = vpop.xlane.xlu1 %855 }
 0x300   :  { %v2332_v16 = vpop.eup %1563  ;;  %1583 = vrcp.f32 %v854_v8 }
 0x301   :  { %v2340_v50 = vpop.eup %1565  ;;  %1585 = vlog2.f32 %v854_v8 }
 0x302   :  { %825 = vadd.xlane.f32.xlu1 %v2292_v63  ;;  %v2348_v61 = vpop.eup %1567 }
 0x303   :  { %2546 = vst [vmem:[#allocation24_spill] sm:$0xff] %v2348_v61  ;;  %v2356_v10 = vpop.eup %1569  ;;  %v858_v13 = vpop.xlane.xlu1 %857 }
 0x304   :  { %2548 = vst [vmem:[#allocation26_spill] sm:$0xff] %v2356_v10  ;;  %v2364_v24 = vpop.eup %1571 }
 0x305   :  { %2550 = vst [vmem:[#allocation28_spill] sm:$0xff] %v2364_v24  ;;  %v2371_v34 = vpop.eup %1573 }
 0x306   :  { %827 = vadd.xlane.f32.xlu1 %v2300_v57  ;;  %2552 = vst [vmem:[#allocation30_spill] sm:$0xff] %v2371_v34  ;;  %v2375_v43 = vpop.eup %1575 }
 0x307   :  { %2553 = vst [vmem:[#allocation31_spill] sm:$0xff] %v2375_v43  ;;  %v2378_v26 = vpop.eup %1577  ;;  %v860_v60 = vpop.xlane.xlu1 %859 }
 0x308   :  { %2554 = vst [vmem:[#allocation32_spill] sm:$0xff] %v2378_v26  ;;  %v2381_v44 = vpop.eup %1579 }
 0x309   :  { %2555 = vst [vmem:[#allocation33_spill] sm:$0xff] %v2381_v44  ;;  %v2384_v53 = vpop.eup %1581 }
 0x30a   :  { %829 = vadd.xlane.f32.xlu1 %v2308_v58  ;;  %2556 = vst [vmem:[#allocation34_spill] sm:$0xff] %v2384_v53  ;;  %v1584_v3 = vpop.eup %1583 }
 0x30b   :  { %v862_v39 = vpop.xlane.xlu1 %861  ;;  %v1586_v38 = vpop.eup %1585 }
 0x30e   :  { %831 = vadd.xlane.f32.xlu1 %v2316_v20 }
 0x30f   :  { %v864_v32 = vpop.xlane.xlu1 %863 }
 0x312   :  { %833 = vadd.xlane.f32.xlu1 %v2324_v0 }
 0x313   :  { %v2387_v6 = vpop.xlane.xlu1 %865 }
 0x316   :  { %835 = vadd.xlane.f32.xlu1 %v2332_v16 }
 0x317   :  { %v2389_v18 = vpop.xlane.xlu1 %867 }
 0x31a   :  { %837 = vadd.xlane.f32.xlu1 %v2340_v50 }
 0x31e   :  { %839 = vadd.xlane.f32.xlu1 %v2348_v61 }
 0x322   :  { %841 = vadd.xlane.f32.xlu1 %v2356_v10 }
 0x326   :  { %843 = vadd.xlane.f32.xlu1 %v2364_v24 }
 0x32a   :  { %845 = vadd.xlane.f32.xlu1 %v2371_v34 }
 0x32e   :  { %847 = vadd.xlane.f32.xlu1 %v2375_v43  ;;  %v2391_v43 = vpop.xlane.xlu1 %869 }
 0x332   :  { %849 = vadd.xlane.f32.xlu1 %v2378_v26  ;;  %v2393_v26 = vpop.xlane.xlu1 %871 }
 0x336   :  { %851 = vadd.xlane.f32.xlu1 %v2381_v44  ;;  %v2395_v23 = vpop.xlane.xlu1 %873 }
 0x33a   :  { %883 = vadd.xlane.f32.xlu1 %v2384_v53  ;;  %v2397_v44 = vpop.xlane.xlu1 %875 }
 0x33e   :  { %v2399_v35 = vpop.xlane.xlu1 %877 }
 0x342   :  { %v2401_v53 = vpop.xlane.xlu1 %881 }
 0x343   :  { %2557 = vst [vmem:[#allocation35_spill] sm:$0xff] %v2401_v53  ;;  %v982_v53 = vmul.f32 0.6931472, %v1586_v38 }
 0x387   :  { %v822_v52 = vpop.xlane.xlu1 %821 }
 0x388   :  { %1587 = vrcp.f32 %v822_v52 }
 0x389   :  { %1589 = vlog2.f32 %v822_v52 }
 0x38a   :  { %1591 = vlog2.f32 %v856_v15 }
 0x38b   :  { %1593 = vrcp.f32 %v856_v15  ;;  %v824_v34 = vpop.xlane.xlu1 %823 }
 0x38c   :  { %1595 = vrcp.f32 %v824_v34 }
 0x38d   :  { %1597 = vlog2.f32 %v824_v34  ;;  %v933_v34 = vmul.f32 %v1584_v3, %v2159_v33 }
 0x38e   :  { %1599 = vlog2.f32 %v858_v13 }
 0x38f   :  { %1601 = vrcp.f32 %v858_v13  ;;  %v826_v49 = vpop.xlane.xlu1 %825 }
 0x390   :  { %1603 = vrcp.f32 %v826_v49 }
 0x391   :  { %1605 = vlog2.f32 %v826_v49  ;;  %v965_v49 = vsub.f32 %v2254_v22, %v2141_v55  ;;  %v966_v55 = vsub.f32 %v2258_v47, %v2145_v5 }
 0x392   :  { %v1588_v24 = vpop.eup %1587  ;;  %1607 = vlog2.f32 %v860_v60 }
 0x393   :  { %v1590_v1 = vpop.eup %1589  ;;  %1609 = vrcp.f32 %v860_v60  ;;  %v901_v8 = vmul.f32 %v1588_v24, %v2276_v14  ;;  %v828_v7 = vpop.xlane.xlu1 %827 }
 0x394   :  { %v1592_v52 = vpop.eup %1591  ;;  %v1014_v15 = vmul.f32 0.6931472, %v1590_v1  ;;  %1611 = vrcp.f32 %v828_v7 }
 0x395   :  { %v1594_v45 = vpop.eup %1593  ;;  %1613 = vlog2.f32 %v828_v7  ;;  %v984_v31 = vmul.f32 0.6931472, %v1592_v52  ;;  %v949_v60 = vsub.f32 %v901_v8, %v933_v34 }
 0x396   :  { %v1596_v13 = vpop.eup %1595  ;;  %1615 = vlog2.f32 %v862_v39  ;;  %v1045_v10 = vsub.f32 %v982_v53, %v1014_v15  ;;  %v934_v33 = vmul.f32 %v1594_v45, %v2166_v29 }
 0x397   :  { %v1598_v51 = vpop.eup %1597  ;;  %1617 = vrcp.f32 %v862_v39  ;;  %v830_v24 = vpop.xlane.xlu1 %829  ;;  %v902_v38 = vmul.f32 %v1596_v13, %v2284_v54 }
 0x398   :  { %v1600_v14 = vpop.eup %1599  ;;  %v1061_v46 = vadd.f32 %v1045_v10, %v965_v49  ;;  %v1016_v1 = vmul.f32 0.6931472, %v1598_v51  ;;  %1619 = vrcp.f32 %v830_v24 }
 0x399   :  { %v1602_v61 = vpop.eup %1601  ;;  %1621 = vlog2.f32 %v830_v24  ;;  %v986_v53 = vmul.f32 0.6931472, %v1600_v14  ;;  %v950_v51 = vsub.f32 %v902_v38, %v934_v33 }
 0x39a   :  { %v1604_v7 = vpop.eup %1603  ;;  %1623 = vlog2.f32 %v864_v32  ;;  %v1077_v3 = vmul.f32 %v1061_v46, %v949_v60  ;;  %v1046_v22 = vsub.f32 %v984_v31, %v1016_v1  ;;  %v935_v45 = vmul.f32 %v1602_v61, %v2174_v11 }
 0x39b   :  { %v1606_v39 = vpop.eup %1605  ;;  %1625 = vrcp.f32 %v864_v32  ;;  %v903_v10 = vmul.f32 %v1604_v7, %v2292_v63  ;;  %v832_v8 = vpop.xlane.xlu1 %831  ;;  %v967_v31 = vsub.f32 %v2264_v4, %v2152_v12 }
 0x39c   :  { %v1608_v54 = vpop.eup %1607  ;;  %v1062_v52 = vadd.f32 %v1046_v22, %v966_v55  ;;  %v1018_v15 = vmul.f32 0.6931472, %v1606_v39  ;;  %1627 = vrcp.f32 %v832_v8 }
 0x39d   :  { %v1610_v29 = vpop.eup %1609  ;;  %1629 = vlog2.f32 %v832_v8  ;;  %v988_v63 = vmul.f32 0.6931472, %v1608_v54  ;;  %v951_v34 = vsub.f32 %v903_v10, %v935_v45 }
 0x39e   :  { %v1612_v46 = vpop.eup %1611  ;;  %1631 = vlog2.f32 %v2387_v6  ;;  %v1078_v5 = vmul.f32 %v1062_v52, %v950_v51  ;;  %v1047_v32 = vsub.f32 %v986_v53, %v1018_v15  ;;  %v936_v38 = vmul.f32 %v1610_v29, %v2181_v40 }
 0x39f   :  { %v1614_v47 = vpop.eup %1613  ;;  %1633 = vrcp.f32 %v2387_v6  ;;  %v904_v13 = vmul.f32 %v1612_v46, %v2300_v57  ;;  %v834_v49 = vpop.xlane.xlu1 %833  ;;  %v968_v6 = vsub.f32 %v2269_v41, %v2156_v21  ;;  %v969_v41 = vsub.f32 %v2274_v25, %v2164_v30 }
 0x3a0   :  { %v1616_v60 = vpop.eup %1615  ;;  %v1093_v24 = vadd.f32 %v1078_v5, %v1077_v3  ;;  %v1063_v11 = vadd.f32 %v1047_v32, %v967_v31  ;;  %v1020_v61 = vmul.f32 0.6931472, %v1614_v47  ;;  %1635 = vrcp.f32 %v834_v49 }
 0x3a1   :  { %v1618_v14 = vpop.eup %1617  ;;  %1637 = vlog2.f32 %v834_v49  ;;  %v990_v57 = vmul.f32 0.6931472, %v1616_v60  ;;  %v952_v7 = vsub.f32 %v904_v13, %v936_v38  ;;  %v970_v25 = vsub.f32 %v2282_v62, %v2171_v36 }
 0x3a2   :  { %v1620_v1 = vpop.eup %1619  ;;  %1639 = vlog2.f32 %v2389_v18  ;;  %v1079_v12 = vmul.f32 %v1063_v11, %v951_v34  ;;  %v1048_v4 = vsub.f32 %v988_v63, %v1020_v61  ;;  %v937_v8 = vmul.f32 %v1618_v14, %v2188_v19 }
 0x3a3   :  { %v1622_v33 = vpop.eup %1621  ;;  %1641 = vrcp.f32 %v2389_v18  ;;  %v905_v3 = vmul.f32 %v1620_v1, %v2308_v58  ;;  %v836_v55 = vpop.xlane.xlu1 %835  ;;  %v971_v62 = vsub.f32 %v2290_v28, %v2179_v27  ;;  %v972_v28 = vsub.f32 %v2298_v37, %v2186_v48 }
 0x3a4   :  { %v1624_v22 = vpop.eup %1623  ;;  %v1094_v39 = vadd.f32 %v1093_v24, %v1079_v12  ;;  %v1064_v40 = vadd.f32 %v1048_v4, %v968_v6  ;;  %v1022_v53 = vmul.f32 0.6931472, %v1622_v33  ;;  %1643 = vrcp.f32 %v836_v55 }
 0x3a5   :  { %v1626_v10 = vpop.eup %1625  ;;  %1645 = vlog2.f32 %v836_v55  ;;  %v992_v58 = vmul.f32 0.6931472, %v1624_v22  ;;  %v953_v52 = vsub.f32 %v905_v3, %v937_v8  ;;  %v973_v37 = vsub.f32 %v2306_v42, %v2193_v59 }
 0x3a6   :  { %v1628_v54 = vpop.eup %1627  ;;  %1647 = vlog2.f32 %v2391_v43  ;;  %v1080_v21 = vmul.f32 %v1064_v40, %v952_v7  ;;  %v1049_v18 = vsub.f32 %v990_v57, %v1022_v53  ;;  %v938_v32 = vmul.f32 %v1626_v10, %v2195_v56 }
 0x3a7   :  { %v1630_v51 = vpop.eup %1629  ;;  %1649 = vrcp.f32 %v2391_v43  ;;  %v906_v15 = vmul.f32 %v1628_v54, %v2316_v20  ;;  %v838_v29 = vpop.xlane.xlu1 %837 }
 0x3a8   :  { %v1632_v45 = vpop.eup %1631  ;;  %v1095_v46 = vadd.f32 %v1094_v39, %v1080_v21  ;;  %v1065_v19 = vadd.f32 %v1049_v18, %v969_v41  ;;  %v1024_v5 = vmul.f32 0.6931472, %v1630_v51  ;;  %1651 = vrcp.f32 %v838_v29 }
 0x3a9   :  { %v1634_v31 = vpop.eup %1633  ;;  %1653 = vlog2.f32 %v838_v29  ;;  %v994_v20 = vmul.f32 0.6931472, %v1632_v45  ;;  %v954_v34 = vsub.f32 %v906_v15, %v938_v32  ;;  %v2558_v29 = vld [vmem:[#allocation24_spill] sm:$0xff] }
 0x3aa   :  { %v1636_v47 = vpop.eup %1635  ;;  %1655 = vlog2.f32 %v2393_v26  ;;  %v1081_v30 = vmul.f32 %v1065_v19, %v953_v52  ;;  %v1050_v43 = vsub.f32 %v992_v58, %v1024_v5  ;;  %v939_v14 = vmul.f32 %v1634_v31, %v2202_v2  ;;  %v880_v52 = vpop.xlane.xlu0 %879 }
 0x3ab   :  { %v1638_v63 = vpop.eup %1637  ;;  %1657 = vrcp.f32 %v2393_v26  ;;  %v907_v13 = vmul.f32 %v1636_v47, %v2324_v0  ;;  %v840_v49 = vpop.xlane.xlu1 %839  ;;  %v2559_v47 = vld [vmem:[#allocation11_spill] sm:$0xff] }
 0x3ac   :  { %v1640_v60 = vpop.eup %1639  ;;  %v1096_v24 = vadd.f32 %v1095_v46, %v1081_v30  ;;  %v1066_v56 = vadd.f32 %v1050_v43, %v970_v25  ;;  %v1026_v11 = vmul.f32 0.6931472, %v1638_v63  ;;  %1659 = vrcp.f32 %v840_v49  ;;  %v2560_v25 = vld [vmem:[#allocation7_spill] sm:$0xff] }
 0x3ad   :  { %v1642_v61 = vpop.eup %1641  ;;  %1661 = vlog2.f32 %v840_v49  ;;  %v996_v0 = vmul.f32 0.6931472, %v1640_v60  ;;  %v955_v12 = vsub.f32 %v907_v13, %v939_v14  ;;  %v2561_v43 = vld [vmem:[#allocation19_spill] sm:$0xff]  ;;  %v2562_v49 = vld [vmem:[#allocation26_spill] sm:$0xff] }
 0x3ae   :  { %v1644_v38 = vpop.eup %1643  ;;  %1663 = vlog2.f32 %v2395_v23  ;;  %v1082_v36 = vmul.f32 %v1066_v56, %v954_v34  ;;  %v1051_v26 = vsub.f32 %v994_v20, %v1026_v11  ;;  %v940_v55 = vmul.f32 %v1642_v61, %v2209_v9 }
 0x3af   :  { %v1646_v1 = vpop.eup %1645  ;;  %1665 = vrcp.f32 %v2395_v23  ;;  %v908_v6 = vmul.f32 %v1644_v38, %v2332_v16  ;;  %v842_v4 = vpop.xlane.xlu1 %841 }
 0x3b0   :  { %v1648_v33 = vpop.eup %1647  ;;  %v1097_v57 = vadd.f32 %v1096_v24, %v1082_v36  ;;  %v1067_v2 = vadd.f32 %v1051_v26, %v971_v62  ;;  %v1028_v7 = vmul.f32 0.6931472, %v1646_v1  ;;  %1667 = vrcp.f32 %v842_v4  ;;  %v2563_v36 = vld [vmem:[#allocation13_spill] sm:$0xff]  ;;  %v2564_v1 = vld [vmem:[#allocation35_spill] sm:$0xff] }
 0x3b1   :  { %v1650_v3 = vpop.eup %1649  ;;  %1669 = vlog2.f32 %v842_v4  ;;  %v998_v16 = vmul.f32 0.6931472, %v1648_v33  ;;  %v956_v40 = vsub.f32 %v908_v6, %v940_v55  ;;  %v2566_v6 = vld [vmem:[#allocation20_spill] sm:$0xff] }
 0x3b2   :  { %v1652_v22 = vpop.eup %1651  ;;  %1671 = vlog2.f32 %v2397_v44  ;;  %v1083_v27 = vmul.f32 %v1067_v2, %v955_v12  ;;  %v1052_v23 = vsub.f32 %v996_v0, %v1028_v7  ;;  %v941_v18 = vmul.f32 %v1650_v3, %v2216_v17  ;;  %v2565_v12 = vld [vmem:[#allocation8_spill] sm:$0xff] }
 0x3b3   :  { %v1654_v39 = vpop.eup %1653  ;;  %1673 = vrcp.f32 %v2397_v44  ;;  %v909_v53 = vmul.f32 %v1652_v22, %v2340_v50  ;;  %v844_v10 = vpop.xlane.xlu1 %843  ;;  %v975_v4 = vsub.f32 %v2566_v6, %v2565_v12  ;;  %v2567_v3 = vld [vmem:[#allocation28_spill] sm:$0xff] }
 0x3b4   :  { %v1656_v8 = vpop.eup %1655  ;;  %v1098_v54 = vadd.f32 %v1097_v57, %v1083_v27  ;;  %v1068_v9 = vadd.f32 %v1052_v23, %v972_v28  ;;  %v1030_v21 = vmul.f32 0.6931472, %v1654_v39  ;;  %1675 = vrcp.f32 %v844_v10 }
 0x3b5   :  { %v1658_v41 = vpop.eup %1657  ;;  %1677 = vlog2.f32 %v844_v10  ;;  %v1000_v50 = vmul.f32 0.6931472, %v1656_v8  ;;  %v957_v15 = vsub.f32 %v909_v53, %v941_v18  ;;  %v2568_v53 = vld [vmem:[#allocation15_spill] sm:$0xff] }
 0x3b6   :  { %v1660_v51 = vpop.eup %1659  ;;  %1679 = vlog2.f32 %v2399_v35  ;;  %v1084_v48 = vmul.f32 %v1068_v9, %v956_v40  ;;  %v1053_v44 = vsub.f32 %v998_v16, %v1030_v21  ;;  %v942_v30 = vmul.f32 %v1658_v41, %v2559_v47  ;;  %v2570_v9 = vld [vmem:[#allocation21_spill] sm:$0xff] }
 0x3b7   :  { %v1662_v58 = vpop.eup %1661  ;;  %1681 = vrcp.f32 %v2399_v35  ;;  %v910_v45 = vmul.f32 %v1660_v51, %v2558_v29  ;;  %v846_v46 = vpop.xlane.xlu1 %845  ;;  %v974_v35 = vsub.f32 %v2561_v43, %v2560_v25  ;;  %v2575_v43 = vld [vmem:[#allocation31_spill] sm:$0xff] }
 0x3b8   :  { %v1664_v19 = vpop.eup %1663  ;;  %v1099_v17 = vadd.f32 %v1098_v54, %v1084_v48  ;;  %v1069_v5 = vadd.f32 %v1053_v44, %v973_v37  ;;  %v1032_v31 = vmul.f32 0.6931472, %v1662_v58  ;;  %1683 = vrcp.f32 %v846_v46  ;;  %v2569_v54 = vld [vmem:[#allocation9_spill] sm:$0xff]  ;;  %v2571_v48 = vld [vmem:[#allocation30_spill] sm:$0xff] }
 0x3b9   :  { %v1666_v32 = vpop.eup %1665  ;;  %1685 = vlog2.f32 %v846_v46  ;;  %v1002_v34 = vmul.f32 0.6931472, %v1664_v19  ;;  %v958_v13 = vsub.f32 %v910_v45, %v942_v30  ;;  %v976_v21 = vsub.f32 %v2570_v9, %v2569_v54  ;;  %v2572_v46 = vld [vmem:[#allocation16_spill] sm:$0xff] }
 0x3ba   :  { %v1668_v59 = vpop.eup %1667  ;;  %1687 = vlog2.f32 %v880_v52  ;;  %v1085_v42 = vmul.f32 %v1069_v5, %v957_v15  ;;  %v1054_v63 = vsub.f32 %v1000_v50, %v1032_v31  ;;  %v943_v62 = vmul.f32 %v1666_v32, %v2563_v36  ;;  %v2573_v31 = vld [vmem:[#allocation10_spill] sm:$0xff] }
 0x3bb   :  { %v1670_v20 = vpop.eup %1669  ;;  %1689 = vrcp.f32 %v880_v52  ;;  %v911_v60 = vmul.f32 %v1668_v59, %v2562_v49  ;;  %v848_v24 = vpop.xlane.xlu1 %847  ;;  %v2574_v32 = vld [vmem:[#allocation22_spill] sm:$0xff] }
 0x3bc   :  { %v1672_v56 = vpop.eup %1671  ;;  %v1100_v11 = vadd.f32 %v1099_v17, %v1085_v42  ;;  %v1070_v61 = vadd.f32 %v1054_v63, %v974_v35  ;;  %v1034_v14 = vmul.f32 0.6931472, %v1670_v20  ;;  %1691 = vrcp.f32 %v848_v24 }
 0x3bd   :  { %v1674_v38 = vpop.eup %1673  ;;  %1693 = vlog2.f32 %v848_v24  ;;  %v1004_v2 = vmul.f32 0.6931472, %v1672_v56  ;;  %v959_v7 = vsub.f32 %v911_v60, %v943_v62  ;;  %v977_v47 = vsub.f32 %v2574_v32, %v2573_v31  ;;  %v2576_v24 = vld [vmem:[#allocation17_spill] sm:$0xff] }
 0x3be   :  { %v1676_v26 = vpop.eup %1675  ;;  %1695 = vlog2.f32 %v2564_v1  ;;  %v1086_v0 = vmul.f32 %v1070_v61, %v958_v13  ;;  %v1055_v33 = vsub.f32 %v1002_v34, %v1034_v14  ;;  %v944_v10 = vmul.f32 %v1674_v38, %v2568_v53  ;;  %v2577_v61 = vld [vmem:[#allocation12_spill] sm:$0xff]  ;;  %v2578_v14 = vld [vmem:[#allocation23_spill] sm:$0xff] }
 0x3bf   :  { %v1678_v57 = vpop.eup %1677  ;;  %1697 = vrcp.f32 %v2564_v1  ;;  %v912_v55 = vmul.f32 %v1676_v26, %v2567_v3  ;;  %v850_v22 = vpop.xlane.xlu1 %849  ;;  %v978_v38 = vsub.f32 %v2578_v14, %v2577_v61 }
 0x3c0   :  { %v1680_v27 = vpop.eup %1679  ;;  %v1101_v28 = vadd.f32 %v1100_v11, %v1086_v0  ;;  %v1071_v23 = vadd.f32 %v1055_v33, %v975_v4  ;;  %v1036_v39 = vmul.f32 0.6931472, %v1678_v57  ;;  %1699 = vrcp.f32 %v850_v22  ;;  %v2579_v4 = vld [vmem:[#allocation32_spill] sm:$0xff] }
 0x3c1   :  { %v1682_v16 = vpop.eup %1681  ;;  %1701 = vlog2.f32 %v850_v22  ;;  %v1006_v51 = vmul.f32 0.6931472, %v1680_v27  ;;  %v960_v50 = vsub.f32 %v912_v55, %v944_v10  ;;  %v2581_v55 = vld [vmem:[#allocation14_spill] sm:$0xff]  ;;  %v2582_v22 = vld [vmem:[#allocation25_spill] sm:$0xff] }
 0x3c2   :  { %v1684_v40 = vpop.eup %1683  ;;  %v1087_v8 = vmul.f32 %v1071_v23, %v959_v7  ;;  %v1056_v41 = vsub.f32 %v1004_v2, %v1036_v39  ;;  %v945_v19 = vmul.f32 %v1682_v16, %v2572_v46  ;;  %v2580_v7 = vld [vmem:[#allocation18_spill] sm:$0xff]  ;;  %v979_v27 = vsub.f32 %v2582_v22, %v2581_v55 }
 0x3c3   :  { %v1686_v18 = vpop.eup %1685  ;;  %v913_v37 = vmul.f32 %v1684_v40, %v2571_v48  ;;  %v852_v44 = vpop.xlane.xlu1 %851 }
 0x3c4   :  { %v1688_v58 = vpop.eup %1687  ;;  %v1072_v52 = vadd.f32 %v1056_v41, %v976_v21  ;;  %v1038_v15 = vmul.f32 0.6931472, %v1686_v18  ;;  %v1102_v29 = vadd.f32 %v1101_v28, %v1087_v8  ;;  %1703 = vrcp.f32 %v852_v44  ;;  %v2583_v41 = vld [vmem:[#allocation34_spill] sm:$0xff] }
 0x3c5   :  { %v1690_v45 = vpop.eup %1689  ;;  %v1008_v42 = vmul.f32 0.6931472, %v1688_v58  ;;  %1705 = vlog2.f32 %v852_v44  ;;  %v961_v63 = vsub.f32 %v913_v37, %v945_v19  ;;  %v2584_v37 = vld [vmem:[#allocation33_spill] sm:$0xff] }
 0x3c6   :  { %v1692_v17 = vpop.eup %1691  ;;  %v1088_v5 = vmul.f32 %v1072_v52, %v960_v50  ;;  %v1057_v30 = vsub.f32 %v1006_v51, %v1038_v15  ;;  %v946_v56 = vmul.f32 %v1690_v45, %v2576_v24  ;;  %v2585_v58 = vld [vmem:[#allocation29_spill] sm:$0xff]  ;;  %v2586_v50 = vld [vmem:[#allocation27_spill] sm:$0xff] }
 0x3c7   :  { %v1694_v59 = vpop.eup %1693  ;;  %v884_v25 = vpop.xlane.xlu1 %883  ;;  %v914_v35 = vmul.f32 %v1692_v17, %v2575_v43  ;;  %v980_v52 = vsub.f32 %v2586_v50, %v2585_v58 }
 0x3c8   :  { %v1696_v20 = vpop.eup %1695  ;;  %v1073_v34 = vadd.f32 %v1057_v30, %v977_v47  ;;  %v1040_v13 = vmul.f32 0.6931472, %v1694_v59  ;;  %1707 = vrcp.f32 %v884_v25  ;;  %v1103_v49 = vadd.f32 %v1102_v29, %v1088_v5 }
 0x3c9   :  { %v1698_v60 = vpop.eup %1697  ;;  %1709 = vlog2.f32 %v884_v25  ;;  %v1010_v1 = vmul.f32 0.6931472, %v1696_v20  ;;  %v962_v0 = vsub.f32 %v914_v35, %v946_v56 }
 0x3ca   :  { %v1700_v11 = vpop.eup %1699  ;;  %v1058_v36 = vsub.f32 %v1008_v42, %v1040_v13  ;;  %v1089_v62 = vmul.f32 %v1073_v34, %v961_v63  ;;  %v947_v3 = vmul.f32 %v1698_v60, %v2580_v7 }
 0x3cb   :  { %v1702_v26 = vpop.eup %1701  ;;  %v915_v33 = vmul.f32 %v1700_v11, %v2579_v4 }
 0x3cc   :  { %v1074_v12 = vadd.f32 %v1058_v36, %v978_v38  ;;  %v1042_v6 = vmul.f32 0.6931472, %v1702_v26  ;;  %v1104_v57 = vadd.f32 %v1103_v49, %v1089_v62 }
 0x3cd   :  { %v963_v39 = vsub.f32 %v915_v33, %v947_v3 }
 0x3ce   :  { %v1059_v2 = vsub.f32 %v1010_v1, %v1042_v6  ;;  %v1090_v28 = vmul.f32 %v1074_v12, %v962_v0  ;;  %v1704_v23 = vpop.eup %1703 }
 0x3cf   :  { %v1706_v53 = vpop.eup %1705  ;;  %v916_v44 = vmul.f32 %v1704_v23, %v2584_v37 }
 0x3d0   :  { %v1075_v16 = vadd.f32 %v1059_v2, %v979_v27  ;;  %v1105_v40 = vadd.f32 %v1104_v57, %v1090_v28  ;;  %v1044_v9 = vmul.f32 0.6931472, %v1706_v53 }
 0x3d2   :  { %v1708_v10 = vpop.eup %1707  ;;  %v1091_v8 = vmul.f32 %v1075_v16, %v963_v39 }
 0x3d3   :  { %v1710_v54 = vpop.eup %1709  ;;  %v948_v18 = vmul.f32 %v1708_v10, %v2583_v41 }
 0x3d4   :  { %v1012_v21 = vmul.f32 0.6931472, %v1710_v54  ;;  %v1106_v51 = vadd.f32 %v1105_v40, %v1091_v8 }
 0x3d5   :  { %v964_v15 = vsub.f32 %v916_v44, %v948_v18 }
 0x3d6   :  { %v1060_v48 = vsub.f32 %v1012_v21, %v1044_v9 }
 0x3d8   :  { %v1076_v29 = vadd.f32 %v1060_v48, %v980_v52 }
 0x3da   :  { %v1092_v45 = vmul.f32 %v1076_v29, %v964_v15 }
 0x3dc   :  { %v1107_v46 = vadd.f32 %v1106_v51, %v1092_v45 }
 0x3de   :  { %1108 = vadd.xlane.f32.xlu1 %v1107_v46 }
 0x46b   :  { %v1109_v19 = vpop.xlane.xlu1 %1108 }
 0x46c   :  { %v1110_v17 = vrot.slane %v1109_v19, 4 }
 0x46e   :  { %v1111_v5 = vadd.f32 %v1110_v17, %v1109_v19 }
 0x470   :  { %v1112_v31 = vrot.slane %v1111_v5, 2 }
 0x472   :  { %v1113_v32 = vadd.f32 %v1112_v31, %v1111_v5 }
 0x474   :  { %v1114_v47 = vrot.slane %v1113_v32, 1 }
 0x476   :  { %v1115_v30 = vadd.f32 %v1114_v47, %v1113_v32 }
 0x478   :  { %1378 = vpush %v1115_v30 }
 0x4a9   :  { %s1379_s0 = spop %1378 }
 0x4aa   :  { %s1118_s16 = smul.f32 0.00390625, %s1379_s0 }
 0x4ac   :  { %1120 = sst [smem:[#allocation4]] %s1118_s16 }
 0x4ad   :  { %1720 = shalt.err (!%p1717_p2)
}
 0x4ae   :  { %s1727_s23 = smov [#allocation4]  }
 0x4af   :  { %1128 = dma.smem_to_hbm %s1727_s23, 16, %s2497_s2, [#allocation5]  }
 0x4b0   :  { %1721 = dma.done.wait [#allocation5], 16  }
 0x4b1   :  { %1722 = vsyncadd [#allocation5], 4294967280 }
 0x4b2   :  { %1132 = sfence }
 0x4b3   :  { %1133 = vsyncpa [#allocation5], 1 }

</bundles_post_ra>
